<compile_context>
chip_gen: v7x
topology: tpu7x:2x2x1
jax: 0.10.0
libtpu: 0.0.40
codegen_flags: <defaults>
</compile_context>

<pallas_src>
import jax
import jax.numpy as jnp
from jax.experimental import pallas as pl
from jax.experimental.pallas import tpu as pltpu  # noqa: F401 (TPU backend)

RGB_CH = 3
NIR_CH = 3
EMBED_DIM = 6          # = RGB_CH + NIR_CH, backbone-stub output channels
NUM_CLASSES = 6
WIDTH = 7              # ClassifierHead(width=7) -> 7x7 feature map inside the stub
BN_EPS = 1e-5
LANE = 128             # pad the tiny class dim up to one full lane width


# ----------------------------------------------------------------------------
# Single fused kernel: per-channel pixel sums + folded affine head.
# ----------------------------------------------------------------------------
def _fused_forward_kernel(rgb_ref, nir_ref, w_ref, b_ref, o_ref):
    # rgb/nir : (B, 3, HW)   pixels on the lane axis
    # w       : (6, LANE)    folded (conv -> pool -> BN -> pool -> fc) map / HW,
    #                        zero-padded to 128 lanes
    # b       : (1, LANE)    folded bias, zero-padded
    # o       : (B, LANE)
    s_rgb = jnp.sum(rgb_ref[...], axis=-1)          # (B, 3) per-channel pixel sums
    s_nir = jnp.sum(nir_ref[...], axis=-1)          # (B, 3)  (1/HW folded into w)

    out = b_ref[...]                                # (1, LANE) -> broadcasts to (B, LANE)
    # 6-term channel contraction as unrolled VPU broadcast MACs (no MXU).
    for c in range(RGB_CH):
        out = out + s_rgb[:, c:c + 1] * w_ref[c:c + 1, :]
    for c in range(NIR_CH):
        out = out + s_nir[:, c:c + 1] * w_ref[RGB_CH + c:RGB_CH + c + 1, :]

    o_ref[...] = out                                # single lane-dense store


# ----------------------------------------------------------------------------
# Wrapper: host-side algebraic fold + one pallas_call.
# ----------------------------------------------------------------------------
def dynn_forward(rgb, nir, params):
    B, crgb, H, W = rgb.shape
    assert crgb == RGB_CH and nir.shape == (B, NIR_CH, H, W)
    assert H == 2 * WIDTH and W == 2 * WIDTH
    HW = H * W

    # All eval-mode ops are affine -> fold once on the host.
    scale = params["bn_gamma"] * jax.lax.rsqrt(params["bn_var"] + BN_EPS)
    bias = params["bn_beta"] - params["bn_mean"] * scale
    w_mid = params["fuse_w"] * scale[None, :]              # (6, 6) conv ∘ BN-scale
    b_mid = params["fuse_b"] * scale + bias                # (6,)
    w_comb = w_mid @ params["fc_w"].T                      # (6, NUM_CLASSES)
    b_comb = b_mid @ params["fc_w"].T + params["fc_b"]     # (NUM_CLASSES,)
    w_comb = w_comb / float(HW)                            # fold the global mean (1/HW)

    # Zero-pad the class dim to a full lane width -> unmasked store in the kernel.
    w_pad = jnp.zeros((EMBED_DIM, LANE), jnp.float32).at[:, :NUM_CLASSES].set(w_comb)
    b_pad = jnp.zeros((1, LANE), jnp.float32).at[0, :NUM_CLASSES].set(b_comb)

    rgb_f = rgb.reshape(B, RGB_CH, HW)                     # pixels -> lane axis
    nir_f = nir.reshape(B, NIR_CH, HW)

    out_pad = pl.pallas_call(
        _fused_forward_kernel,
        out_shape=jax.ShapeDtypeStruct((B, LANE), jnp.float32),
        in_specs=[
            pl.BlockSpec((B, RGB_CH, HW), lambda: (0, 0, 0)),
            pl.BlockSpec((B, NIR_CH, HW), lambda: (0, 0, 0)),
            pl.BlockSpec((EMBED_DIM, LANE), lambda: (0, 0)),
            pl.BlockSpec((1, LANE), lambda: (0, 0)),
        ],
        out_specs=pl.BlockSpec((B, LANE), lambda: (0, 0)),
        # Single-block kernel: nothing to pipeline at this size.
        # TODO(synk): if B grows beyond toy sizes, add grid=(B//TB,) with
        # dimension_semantics=("parallel",) so both v7x TensorCores get work.
    )(rgb_f, nir_f, w_pad, b_pad)

    return out_pad[:, :NUM_CLASSES]


# ----------------------------------------------------------------------------
# Pure-JAX reference (unfused original graph) for validation.
# ----------------------------------------------------------------------------
def _reference_forward(rgb, nir, params):
    B = rgb.shape[0]
    x = jnp.concatenate([rgb, nir], axis=1)                          # (B, 6, 14, 14)
    x = (jnp.einsum("bchw,cd->bdhw", x, params["fuse_w"])
         + params["fuse_b"][None, :, None, None])                    # 1x1 conv
    x = x.reshape(B, EMBED_DIM, WIDTH, 2, WIDTH, 2).mean(axis=(3, 5))  # 2x2 avg pool
    scale = params["bn_gamma"] / jnp.sqrt(params["bn_var"] + BN_EPS)
    bias = params["bn_beta"] - params["bn_mean"] * scale
    x = x * scale[None, :, None, None] + bias[None, :, None, None]   # BN (eval)
    pooled = x.mean(axis=(2, 3))                                     # global avg pool
    return pooled @ params["fc_w"].T + params["fc_b"]                # dropout = id


def init_params():
    key = jax.random.PRNGKey(0)
    k1, k2, k3, k4 = jax.random.split(key, 4)
    params = {
        # backbone stub: 1x1 conv fusing 6 -> 6 channels
        "fuse_w": 0.1 * jax.random.normal(k1, (RGB_CH + NIR_CH, EMBED_DIM), jnp.float32),
        "fuse_b": jnp.linspace(-0.1, 0.1, EMBED_DIM, dtype=jnp.float32),
        # ClassifierHead: BatchNorm2d(6) running stats + affine
        "bn_gamma": jnp.ones((EMBED_DIM,), jnp.float32)
                    + 0.01 * jnp.arange(EMBED_DIM, dtype=jnp.float32),
        "bn_beta": 0.05 * jnp.arange(EMBED_DIM, dtype=jnp.float32),
        "bn_mean": 0.02 * jnp.arange(EMBED_DIM, dtype=jnp.float32),
        "bn_var": jnp.ones((EMBED_DIM,), jnp.float32)
                  + 0.1 * jnp.arange(EMBED_DIM, dtype=jnp.float32),
        # Linear(embed_dim=6 -> num_classes=6)
        "fc_w": 0.2 * jax.random.normal(k3, (NUM_CLASSES, EMBED_DIM), jnp.float32),
        "fc_b": 0.01 * jax.random.normal(k4, (NUM_CLASSES,), jnp.float32),
    }
    return params


if __name__ == "__main__":
    key = jax.random.PRNGKey(0)
    kr, kn = jax.random.split(key)
    # batch=2, 3-channel RGB + 3-channel NIR, 14x14 spatial
    # (backbone stub pools 2x2 down to the 7x7 map the classifier expects)
    rgb = jax.random.normal(kr, (2, 3, 14, 14), jnp.float32)
    nir = jax.random.normal(kn, (2, 3, 14, 14), jnp.float32)

    params = init_params()
    out = dynn_forward(rgb, nir, params)
    jax.block_until_ready(out)
    assert out.shape == (2, NUM_CLASSES) and out.dtype == jnp.float32

    ref = _reference_forward(rgb, nir, params)
    assert jnp.allclose(out, ref, rtol=1e-3, atol=1e-4), (out, ref)
    print("KERNEL_OK")
</pallas_src>

<mosaic_0001>
module attributes {stable_mosaic.version = 11 : i64} {
  func.func @_fused_forward_kernel(%arg0: memref<2x3x196xf32, #tpu.memory_space<vmem>>, %arg1: memref<2x3x196xf32, #tpu.memory_space<vmem>>, %arg2: memref<6x128xf32, #tpu.memory_space<vmem>>, %arg3: memref<1x128xf32, #tpu.memory_space<vmem>>, %arg4: memref<2x128xf32, #tpu.memory_space<vmem>>) attributes {dimension_semantics = [], scalar_prefetch = 0 : i64, scratch_operands = 0 : i64, tpu.core_type = #tpu.core_type<tc>} {
    %c0 = arith.constant 0 : index
    %c0_0 = arith.constant 0 : index
    %c0_1 = arith.constant 0 : index
    %0 = vector.load %arg0[%c0, %c0_0, %c0_1] : memref<2x3x196xf32, #tpu.memory_space<vmem>>, vector<2x3x196xf32>
    %cst = arith.constant dense<0.000000e+00> : vector<2x3xf32>
    %1 = vector.multi_reduction <add>, %0, %cst [2] : vector<2x3x196xf32> to vector<2x3xf32>
    %c0_2 = arith.constant 0 : index
    %c0_3 = arith.constant 0 : index
    %c0_4 = arith.constant 0 : index
    %2 = vector.load %arg1[%c0_2, %c0_3, %c0_4] : memref<2x3x196xf32, #tpu.memory_space<vmem>>, vector<2x3x196xf32>
    %cst_5 = arith.constant dense<0.000000e+00> : vector<2x3xf32>
    %3 = vector.multi_reduction <add>, %2, %cst_5 [2] : vector<2x3x196xf32> to vector<2x3xf32>
    %c0_6 = arith.constant 0 : index
    %c0_7 = arith.constant 0 : index
    %4 = vector.load %arg3[%c0_6, %c0_7] : memref<1x128xf32, #tpu.memory_space<vmem>>, vector<1x128xf32>
    %5 = vector.extract_strided_slice %1 {offsets = [0, 0], sizes = [2, 1], strides = [1, 1]} : vector<2x3xf32> to vector<2x1xf32>
    %c0_8 = arith.constant 0 : index
    %c0_9 = arith.constant 0 : index
    %6 = vector.load %arg2[%c0_8, %c0_9] : memref<6x128xf32, #tpu.memory_space<vmem>>, vector<1x128xf32>
    %7 = vector.broadcast %5 : vector<2x1xf32> to vector<2x128xf32>
    %8 = vector.broadcast %6 : vector<1x128xf32> to vector<2x128xf32>
    %9 = arith.mulf %7, %8 : vector<2x128xf32>
    %10 = vector.broadcast %4 : vector<1x128xf32> to vector<2x128xf32>
    %11 = arith.addf %10, %9 : vector<2x128xf32>
    %12 = vector.extract_strided_slice %1 {offsets = [0, 1], sizes = [2, 1], strides = [1, 1]} : vector<2x3xf32> to vector<2x1xf32>
    %c1 = arith.constant 1 : index
    %c0_10 = arith.constant 0 : index
    %13 = vector.load %arg2[%c1, %c0_10] : memref<6x128xf32, #tpu.memory_space<vmem>>, vector<1x128xf32>
    %14 = vector.broadcast %12 : vector<2x1xf32> to vector<2x128xf32>
    %15 = vector.broadcast %13 : vector<1x128xf32> to vector<2x128xf32>
    %16 = arith.mulf %14, %15 : vector<2x128xf32>
    %17 = arith.addf %11, %16 : vector<2x128xf32>
    %18 = vector.extract_strided_slice %1 {offsets = [0, 2], sizes = [2, 1], strides = [1, 1]} : vector<2x3xf32> to vector<2x1xf32>
    %c2 = arith.constant 2 : index
    %c0_11 = arith.constant 0 : index
    %19 = vector.load %arg2[%c2, %c0_11] : memref<6x128xf32, #tpu.memory_space<vmem>>, vector<1x128xf32>
    %20 = vector.broadcast %18 : vector<2x1xf32> to vector<2x128xf32>
    %21 = vector.broadcast %19 : vector<1x128xf32> to vector<2x128xf32>
    %22 = arith.mulf %20, %21 : vector<2x128xf32>
    %23 = arith.addf %17, %22 : vector<2x128xf32>
    %24 = vector.extract_strided_slice %3 {offsets = [0, 0], sizes = [2, 1], strides = [1, 1]} : vector<2x3xf32> to vector<2x1xf32>
    %c3 = arith.constant 3 : index
    %c0_12 = arith.constant 0 : index
    %25 = vector.load %arg2[%c3, %c0_12] : memref<6x128xf32, #tpu.memory_space<vmem>>, vector<1x128xf32>
    %26 = vector.broadcast %24 : vector<2x1xf32> to vector<2x128xf32>
    %27 = vector.broadcast %25 : vector<1x128xf32> to vector<2x128xf32>
    %28 = arith.mulf %26, %27 : vector<2x128xf32>
    %29 = arith.addf %23, %28 : vector<2x128xf32>
    %30 = vector.extract_strided_slice %3 {offsets = [0, 1], sizes = [2, 1], strides = [1, 1]} : vector<2x3xf32> to vector<2x1xf32>
    %c4 = arith.constant 4 : index
    %c0_13 = arith.constant 0 : index
    %31 = vector.load %arg2[%c4, %c0_13] : memref<6x128xf32, #tpu.memory_space<vmem>>, vector<1x128xf32>
    %32 = vector.broadcast %30 : vector<2x1xf32> to vector<2x128xf32>
    %33 = vector.broadcast %31 : vector<1x128xf32> to vector<2x128xf32>
    %34 = arith.mulf %32, %33 : vector<2x128xf32>
    %35 = arith.addf %29, %34 : vector<2x128xf32>
    %36 = vector.extract_strided_slice %3 {offsets = [0, 2], sizes = [2, 1], strides = [1, 1]} : vector<2x3xf32> to vector<2x1xf32>
    %c5 = arith.constant 5 : index
    %c0_14 = arith.constant 0 : index
    %37 = vector.load %arg2[%c5, %c0_14] : memref<6x128xf32, #tpu.memory_space<vmem>>, vector<1x128xf32>
    %38 = vector.broadcast %36 : vector<2x1xf32> to vector<2x128xf32>
    %39 = vector.broadcast %37 : vector<1x128xf32> to vector<2x128xf32>
    %40 = arith.mulf %38, %39 : vector<2x128xf32>
    %41 = arith.addf %35, %40 : vector<2x128xf32>
    %c0_15 = arith.constant 0 : index
    %c0_16 = arith.constant 0 : index
    %42 = vector.load %arg4[%c0_15, %c0_16] : memref<2x128xf32, #tpu.memory_space<vmem>>, vector<2x128xf32>
    tpu.vector_store %arg4[%c0_15, %c0_16], %41 {strides = array<i32>} : memref<2x128xf32, #tpu.memory_space<vmem>>, vector<2x128xf32>,
    return
  }
}

</mosaic_0001>

<bundles_post_ra>
// kernel: tpu_custom_call.1
= control target key start
LH: loop header
LB: loop body
LE: loop exit
PB: predicated region body
PF: predicated region fallthrough
CT: control target
= control target key end

     0   :  { %vm26_vm0 = vcmask 1042432   ;;  %vm28_vm1 = vcmask 550912   ;;  %s3589_s0 = inlined_call_operand.vmem [shape: f32[2,3,196], index: 0, kind: input, shape index: {}]   ;;  %s3590_s1 = inlined_call_operand.vmem [shape: f32[2,3,196], index: 1, kind: input, shape index: {}]   ;;  %s3591_s2 = inlined_call_operand.vmem [shape: f32[6,128], index: 2, kind: input, shape index: {}]   ;;  %s3592_s3 = inlined_call_operand.vmem [shape: f32[1,128], index: 3, kind: input, shape index: {}]   ;;  %s3593_s4 = inlined_call_operand.hbm [shape: f32[2,128], index: 4, kind: output, shape index: {}]  }
   0x1   :  { %v38_v0 = vld [vmem:[%s3590_s1] sm:$0x77]  ;;  %v39_v6 = vld [vmem:[%s3590_s1 + $0x8] sm:$0x77] }
   0x2   :  { %v18_v1 = vld [vmem:[%s3589_s0] sm:$0x77]  ;;  %v42_v2 = vcombine.high %v38_v0, %v38_v0  ;;  %v46_v3 = vsel %vm26_vm0, %v38_v0, 0.0  ;;  %v19_v7 = vld [vmem:[%s3589_s0 + $0x8] sm:$0x77]  ;;  %v43_v8 = vcombine.high %v39_v6, %v39_v6  ;;  %v51_v12 = vsel %vm26_vm0, %v39_v6, 0.0 }
   0x3   :  { %v22_v4 = vcombine.high %v18_v1, %v18_v1  ;;  %v27_v5 = vsel %vm26_vm0, %v18_v1, 0.0  ;;  %v23_v9 = vcombine.high %v19_v7, %v19_v7  ;;  %v33_v13 = vsel %vm26_vm0, %v19_v7, 0.0 }
   0x4   :  { %v47_v10 = vsel %vm28_vm1, %v42_v2, 0.0 }
   0x5   :  { %v29_v11 = vsel %vm28_vm1, %v22_v4, 0.0 }
   0x6   :  { %9 = vsyncpa [#allocation3], 0  ;;  %v48_v14 = vadd.f32 %v47_v10, %v46_v3  ;;  %v30_v15 = vadd.f32 %v29_v11, %v27_v5  ;;  %v52_v16 = vsel %vm28_vm1, %v43_v8, 0.0  ;;  %v34_v17 = vsel %vm28_vm1, %v23_v9, 0.0  ;;  %v2595_v20 = vld [vmem:[%s3591_s2] ss:$0 sm:$0xff] }
   0x7   :  { %v53_v18 = vadd.f32 %v52_v16, %v51_v12  ;;  %v35_v19 = vadd.f32 %v34_v17, %v33_v13  ;;  %v2634_v21 = vmov 0   ;;  %v2597_v22 = vld [vmem:[%s3591_s2 + $0x1] ss:$0 sm:$0xff]  ;;  %v3594_v23 = vlaneseq }
   0x8   :  { %49 = vadd.xlane.f32.xlu1 %v48_v14  ;;  %31 = vadd.xlane.f32.xlu0 %v30_v15  ;;  %vm327_vm2 = vcmask 130112   ;;  %vm334_vm3 = vcmask 195712   ;;  %vm341_vm4 = vcmask 261312   ;;  %vm348_vm5 = vcmask 326912  }
   0x9   :  { %2605 = vset.pattern.permute.xlu1 %v2634_v21  ;;  %2604 = vset.pattern.permute.xlu0 %v2634_v21  ;;  %v2688_v26 = vshrl.u32 %v3594_v23, 7  ;;  %vm355_vm6 = vcmask 392512   ;;  %vm362_vm7 = vcmask 458112   ;;  %vm369_vm8 = vcmask 523712  }
   0xa   :  { %vm376_vm9 = vcmask 589312   ;;  %vm383_vm10 = vcmask 654912   ;;  %vm390_vm11 = vcmask 720512   ;;  %vm397_vm12 = vcmask 786112  }
   0xb   :  { %v2695_v29 = vsub.s32 0, %v2688_v26  ;;  %vm404_vm13 = vcmask 851712   ;;  %vm411_vm14 = vcmask 917312   ;;  %vm418_vm15 = vcmask 982912  }
   0xc   :  { %54 = vadd.xlane.f32.xlu1 %v53_v18  ;;  %36 = vadd.xlane.f32.xlu0 %v35_v19  ;;  %v2708_v18 = vsub.s32 1, %v2688_v26  ;;  %vm425_vm0 = vcmask 1048512   ;;  %vm506_vm1 = vcmask 1041409  }
  0x1d   :  { %76 = vbcast.lane.b32.xlu1 %v2595_v20, 264 }
  0x21   :  { %80 = vbcast.lane.b32.xlu1 %v2595_v20, 272 }
  0x22   :  { %72 = vbcast.lane.b32.xlu0 %v2595_v20, 256 }
  0x25   :  { %84 = vbcast.lane.b32.xlu1 %v2595_v20, 280 }
  0x26   :  { %88 = vbcast.lane.b32.xlu0 %v2595_v20, 288 }
  0x29   :  { %92 = vbcast.lane.b32.xlu1 %v2595_v20, 296 }
  0x2a   :  { %96 = vbcast.lane.b32.xlu0 %v2595_v20, 304 }
  0x2d   :  { %100 = vbcast.lane.b32.xlu1 %v2595_v20, 312 }
  0x2e   :  { %104 = vbcast.lane.b32.xlu0 %v2595_v20, 320 }
  0x31   :  { %108 = vbcast.lane.b32.xlu1 %v2595_v20, 328 }
  0x32   :  { %112 = vbcast.lane.b32.xlu0 %v2595_v20, 336 }
  0x35   :  { %116 = vbcast.lane.b32.xlu1 %v2595_v20, 344 }
  0x36   :  { %120 = vbcast.lane.b32.xlu0 %v2595_v20, 352 }
  0x39   :  { %124 = vbcast.lane.b32.xlu1 %v2595_v20, 360 }
  0x3a   :  { %128 = vbcast.lane.b32.xlu0 %v2595_v20, 368 }
  0x3d   :  { %132 = vbcast.lane.b32.xlu1 %v2595_v20, 376 }
  0x3e   :  { %529 = vbcast.lane.b32.xlu0 %v2597_v22, 264 }
  0x41   :  { %525 = vbcast.lane.b32.xlu1 %v2597_v22, 256 }
  0x42   :  { %537 = vbcast.lane.b32.xlu0 %v2597_v22, 280 }
  0x45   :  { %533 = vbcast.lane.b32.xlu1 %v2597_v22, 272 }
  0x46   :  { %545 = vbcast.lane.b32.xlu0 %v2597_v22, 296 }
  0x49   :  { %541 = vbcast.lane.b32.xlu1 %v2597_v22, 288 }
  0x4a   :  { %553 = vbcast.lane.b32.xlu0 %v2597_v22, 312 }
  0x4d   :  { %549 = vbcast.lane.b32.xlu1 %v2597_v22, 304 }
  0x4e   :  { %561 = vbcast.lane.b32.xlu0 %v2597_v22, 328 }
  0x51   :  { %557 = vbcast.lane.b32.xlu1 %v2597_v22, 320 }
  0x52   :  { %569 = vbcast.lane.b32.xlu0 %v2597_v22, 344 }
  0x55   :  { %565 = vbcast.lane.b32.xlu1 %v2597_v22, 336 }
  0x56   :  { %577 = vbcast.lane.b32.xlu0 %v2597_v22, 360 }
  0x59   :  { %573 = vbcast.lane.b32.xlu1 %v2597_v22, 352 }
  0x5a   :  { %585 = vbcast.lane.b32.xlu0 %v2597_v22, 376 }
  0x5d   :  { %581 = vbcast.lane.b32.xlu1 %v2597_v22, 368 }
  0x95   :  { %v2683_v24 = vpop.xlane.xlu1 %49  ;;  %v2685_v25 = vpop.xlane.xlu0 %31 }
  0x96   :  { %3606 = vst [vmem:[#allocation5_spill] sm:$0xff] %v2683_v24  ;;  %v61_v30 = vrot.slane %v2685_v25, %v2695_v29  ;;  %v514_v21 = vrot.slane %v2685_v25, %v2708_v18 }
  0x99   :  { %v2690_v27 = vpop.xlane.xlu1 %54  ;;  %v2692_v28 = vpop.xlane.xlu0 %36 }
  0x9a   :  { %v65_v61 = vrot.slane %v2692_v28, %v2695_v29 }
  0x9d   :  { %v77_v31 = vpop.permute.xlu1 %76  ;;  %v73_v32 = vpop.permute.xlu0 %72 }
  0x9e   :  { %v151_v33 = vmul.f32 %v77_v31, %v61_v30  ;;  %v150_v34 = vmul.f32 %v73_v32, %v61_v30  ;;  %v166_v63 = vmul.f32 %v73_v32, %v65_v61  ;;  %v167_v1 = vmul.f32 %v77_v31, %v65_v61 }
  0xa0   :  { %224 = vperm.xlu1 %2605, %v151_v33   ;;  %221 = vperm.xlu0 %2604, %v150_v34  }
  0xa1   :  { %v81_v35 = vpop.permute.xlu1 %80  ;;  %v89_v36 = vpop.permute.xlu0 %88 }
  0xa2   :  { %v152_v37 = vmul.f32 %v81_v35, %v61_v30  ;;  %v154_v40 = vmul.f32 %v89_v36, %v61_v30  ;;  %v168_v2 = vmul.f32 %v81_v35, %v65_v61  ;;  %v170_v3 = vmul.f32 %v89_v36, %v65_v61 }
  0xa4   :  { %227 = vperm.xlu1 %2605, %v152_v37  }
  0xa5   :  { %v85_v38 = vpop.permute.xlu1 %84  ;;  %v97_v39 = vpop.permute.xlu0 %96 }
  0xa6   :  { %v153_v41 = vmul.f32 %v85_v38, %v61_v30  ;;  %v156_v44 = vmul.f32 %v97_v39, %v61_v30  ;;  %v169_v4 = vmul.f32 %v85_v38, %v65_v61  ;;  %v172_v5 = vmul.f32 %v97_v39, %v65_v61 }
  0xa8   :  { %230 = vperm.xlu0 %2604, %v153_v41   ;;  %233 = vperm.xlu1 %2605, %v154_v40  }
  0xa9   :  { %v93_v42 = vpop.permute.xlu1 %92  ;;  %v105_v43 = vpop.permute.xlu0 %104 }
  0xaa   :  { %v155_v45 = vmul.f32 %v93_v42, %v61_v30  ;;  %v158_v48 = vmul.f32 %v105_v43, %v61_v30  ;;  %v171_v6 = vmul.f32 %v93_v42, %v65_v61  ;;  %v174_v8 = vmul.f32 %v105_v43, %v65_v61 }
  0xac   :  { %236 = vperm.xlu0 %2604, %v155_v45   ;;  %239 = vperm.xlu1 %2605, %v156_v44  }
  0xad   :  { %v101_v46 = vpop.permute.xlu1 %100  ;;  %v113_v47 = vpop.permute.xlu0 %112 }
  0xae   :  { %v157_v49 = vmul.f32 %v101_v46, %v61_v30  ;;  %v160_v52 = vmul.f32 %v113_v47, %v61_v30  ;;  %v173_v9 = vmul.f32 %v101_v46, %v65_v61  ;;  %v176_v11 = vmul.f32 %v113_v47, %v65_v61 }
  0xb0   :  { %242 = vperm.xlu0 %2604, %v157_v49   ;;  %245 = vperm.xlu1 %2605, %v158_v48  }
  0xb1   :  { %v109_v50 = vpop.permute.xlu1 %108  ;;  %v121_v51 = vpop.permute.xlu0 %120 }
  0xb2   :  { %v159_v53 = vmul.f32 %v109_v50, %v61_v30  ;;  %v162_v55 = vmul.f32 %v121_v51, %v61_v30  ;;  %v175_v12 = vmul.f32 %v109_v50, %v65_v61  ;;  %v178_v14 = vmul.f32 %v121_v51, %v65_v61 }
  0xb4   :  { %248 = vperm.xlu0 %2604, %v159_v53   ;;  %251 = vperm.xlu1 %2605, %v160_v52  }
  0xb5   :  { %v117_v54 = vpop.permute.xlu1 %116  ;;  %v129_v57 = vpop.permute.xlu0 %128 }
  0xb6   :  { %v161_v56 = vmul.f32 %v117_v54, %v61_v30  ;;  %v164_v59 = vmul.f32 %v129_v57, %v61_v30  ;;  %v177_v15 = vmul.f32 %v117_v54, %v65_v61  ;;  %v180_v19 = vmul.f32 %v129_v57, %v65_v61 }
  0xb8   :  { %254 = vperm.xlu0 %2604, %v161_v56   ;;  %257 = vperm.xlu1 %2605, %v162_v55   ;;  %v518_v56 = vrot.slane %v2692_v28, %v2708_v18 }
  0xb9   :  { %v125_v58 = vpop.permute.xlu1 %124  ;;  %v2703_v10 = vpop.permute.xlu0 %529 }
  0xba   :  { %v163_v60 = vmul.f32 %v125_v58, %v61_v30  ;;  %v179_v20 = vmul.f32 %v125_v58, %v65_v61  ;;  %v604_v33 = vmul.f32 %v2703_v10, %v514_v21 }
  0xbc   :  { %260 = vperm.xlu0 %2604, %v163_v60   ;;  %263 = vperm.xlu1 %2605, %v164_v59   ;;  %v620_v59 = vmul.f32 %v2703_v10, %v518_v56 }
  0xbd   :  { %v133_v62 = vpop.permute.xlu1 %132  ;;  %v538_v16 = vpop.permute.xlu0 %537 }
  0xbe   :  { %v165_v0 = vmul.f32 %v133_v62, %v61_v30  ;;  %v181_v30 = vmul.f32 %v133_v62, %v65_v61  ;;  %v606_v37 = vmul.f32 %v538_v16, %v514_v21  ;;  %v622_v61 = vmul.f32 %v538_v16, %v518_v56 }
  0xc0   :  { %266 = vperm.xlu0 %2604, %v165_v0   ;;  %269 = vperm.xlu1 %2605, %v166_v63  }
  0xc1   :  { %v2701_v7 = vpop.permute.xlu1 %525  ;;  %v546_v22 = vpop.permute.xlu0 %545 }
  0xc2   :  { %v603_v31 = vmul.f32 %v2701_v7, %v514_v21  ;;  %v608_v40 = vmul.f32 %v546_v22, %v514_v21  ;;  %v619_v57 = vmul.f32 %v2701_v7, %v518_v56  ;;  %v624_v63 = vmul.f32 %v546_v22, %v518_v56 }
  0xc4   :  { %272 = vperm.xlu0 %2604, %v167_v1   ;;  %275 = vperm.xlu1 %2605, %v168_v2  }
  0xc5   :  { %v2705_v13 = vpop.permute.xlu1 %533  ;;  %v554_v35 = vpop.permute.xlu0 %553 }
  0xc6   :  { %v605_v34 = vmul.f32 %v2705_v13, %v514_v21  ;;  %v610_v43 = vmul.f32 %v554_v35, %v514_v21  ;;  %v621_v60 = vmul.f32 %v2705_v13, %v518_v56  ;;  %v626_v1 = vmul.f32 %v554_v35, %v518_v56 }
  0xc8   :  { %278 = vperm.xlu0 %2604, %v169_v4   ;;  %281 = vperm.xlu1 %2605, %v170_v3  }
  0xc9   :  { %v542_v17 = vpop.permute.xlu1 %541  ;;  %v562_v39 = vpop.permute.xlu0 %561 }
  0xca   :  { %v607_v38 = vmul.f32 %v542_v17, %v514_v21  ;;  %v612_v47 = vmul.f32 %v562_v39, %v514_v21  ;;  %v623_v62 = vmul.f32 %v542_v17, %v518_v56  ;;  %v628_v3 = vmul.f32 %v562_v39, %v518_v56 }
  0xcc   :  { %284 = vperm.xlu0 %2604, %v171_v6   ;;  %287 = vperm.xlu1 %2605, %v172_v5  }
  0xcd   :  { %v550_v32 = vpop.permute.xlu1 %549  ;;  %v570_v45 = vpop.permute.xlu0 %569 }
  0xce   :  { %v609_v41 = vmul.f32 %v550_v32, %v514_v21  ;;  %v614_v50 = vmul.f32 %v570_v45, %v514_v21  ;;  %v625_v0 = vmul.f32 %v550_v32, %v518_v56  ;;  %v630_v5 = vmul.f32 %v570_v45, %v518_v56 }
  0xd0   :  { %290 = vperm.xlu0 %2604, %v173_v9   ;;  %293 = vperm.xlu1 %2605, %v174_v8   ;;  %v2598_v9 = vld [vmem:[%s3591_s2 + $0x2] ss:$0 sm:$0xff] }
  0xd1   :  { %v558_v36 = vpop.permute.xlu1 %557  ;;  %v578_v49 = vpop.permute.xlu0 %577 }
  0xd2   :  { %v611_v44 = vmul.f32 %v558_v36, %v514_v21  ;;  %v616_v53 = vmul.f32 %v578_v49, %v514_v21  ;;  %v627_v2 = vmul.f32 %v558_v36, %v518_v56  ;;  %v632_v7 = vmul.f32 %v578_v49, %v518_v56 }
  0xd4   :  { %296 = vperm.xlu0 %2604, %v175_v12   ;;  %299 = vperm.xlu1 %2605, %v176_v11  }
  0xd5   :  { %v566_v42 = vpop.permute.xlu1 %565  ;;  %v586_v55 = vpop.permute.xlu0 %585 }
  0xd6   :  { %v613_v48 = vmul.f32 %v566_v42, %v514_v21  ;;  %v618_v58 = vmul.f32 %v586_v55, %v514_v21  ;;  %v629_v4 = vmul.f32 %v566_v42, %v518_v56  ;;  %v634_v10 = vmul.f32 %v586_v55, %v518_v56 }
  0xd8   :  { %302 = vperm.xlu0 %2604, %v177_v15   ;;  %305 = vperm.xlu1 %2605, %v178_v14  }
  0xd9   :  { %v574_v46 = vpop.permute.xlu1 %573 }
  0xda   :  { %v615_v51 = vmul.f32 %v574_v46, %v514_v21  ;;  %v631_v6 = vmul.f32 %v574_v46, %v518_v56 }
  0xdc   :  { %308 = vperm.xlu0 %2604, %v179_v20   ;;  %311 = vperm.xlu1 %2605, %v180_v19  }
  0xdd   :  { %v582_v52 = vpop.permute.xlu1 %581 }
  0xde   :  { %v617_v54 = vmul.f32 %v582_v52, %v514_v21  ;;  %v633_v8 = vmul.f32 %v582_v52, %v518_v56 }
  0xe0   :  { %314 = vperm.xlu0 %2604, %v181_v30   ;;  %668 = vperm.xlu1 %2605, %v603_v31  }
  0xe4   :  { %674 = vperm.xlu1 %2605, %v605_v34   ;;  %671 = vperm.xlu0 %2604, %v604_v33  }
  0xe8   :  { %680 = vperm.xlu1 %2605, %v607_v38   ;;  %677 = vperm.xlu0 %2604, %v606_v37  }
  0xec   :  { %686 = vperm.xlu1 %2605, %v609_v41   ;;  %683 = vperm.xlu0 %2604, %v608_v40  }
  0xf0   :  { %692 = vperm.xlu1 %2605, %v611_v44   ;;  %689 = vperm.xlu0 %2604, %v610_v43  }
  0xf4   :  { %698 = vperm.xlu1 %2605, %v613_v48   ;;  %695 = vperm.xlu0 %2604, %v612_v47  }
  0xf8   :  { %704 = vperm.xlu1 %2605, %v615_v51   ;;  %701 = vperm.xlu0 %2604, %v614_v50  }
  0xfc   :  { %710 = vperm.xlu1 %2605, %v617_v54   ;;  %707 = vperm.xlu0 %2604, %v616_v53  }
 0x100   :  { %716 = vperm.xlu1 %2605, %v619_v57   ;;  %713 = vperm.xlu0 %2604, %v618_v58  }
 0x104   :  { %722 = vperm.xlu1 %2605, %v621_v60   ;;  %719 = vperm.xlu0 %2604, %v620_v59  }
 0x108   :  { %728 = vperm.xlu1 %2605, %v623_v62   ;;  %725 = vperm.xlu0 %2604, %v622_v61  }
 0x10c   :  { %734 = vperm.xlu1 %2605, %v625_v0   ;;  %731 = vperm.xlu0 %2604, %v624_v63  }
 0x110   :  { %740 = vperm.xlu1 %2605, %v627_v2   ;;  %737 = vperm.xlu0 %2604, %v626_v1  }
 0x114   :  { %746 = vperm.xlu1 %2605, %v629_v4   ;;  %743 = vperm.xlu0 %2604, %v628_v3  }
 0x118   :  { %752 = vperm.xlu1 %2605, %v631_v6   ;;  %749 = vperm.xlu0 %2604, %v630_v5  }
 0x11c   :  { %758 = vperm.xlu1 %2605, %v633_v8   ;;  %755 = vperm.xlu0 %2604, %v632_v7  }
 0x11f   :  { %v2723_v11 = vpop.permute.xlu1 %224  ;;  %v2725_v12 = vpop.permute.xlu0 %221 }
 0x120   :  { %761 = vperm.xlu0 %2604, %v634_v10   ;;  %939 = vbcast.lane.b32.xlu1 %v2598_v9, 256 }
 0x123   :  { %v2727_v13 = vpop.permute.xlu1 %227 }
 0x124   :  { %947 = vbcast.lane.b32.xlu1 %v2598_v9, 272  ;;  %943 = vbcast.lane.b32.xlu0 %v2598_v9, 264 }
 0x127   :  { %v2729_v14 = vpop.permute.xlu1 %233  ;;  %v2731_v15 = vpop.permute.xlu0 %230 }
 0x128   :  { %955 = vbcast.lane.b32.xlu1 %v2598_v9, 288  ;;  %951 = vbcast.lane.b32.xlu0 %v2598_v9, 280 }
 0x12b   :  { %v2733_v16 = vpop.permute.xlu1 %239  ;;  %v2735_v17 = vpop.permute.xlu0 %236 }
 0x12c   :  { %963 = vbcast.lane.b32.xlu1 %v2598_v9, 304  ;;  %959 = vbcast.lane.b32.xlu0 %v2598_v9, 296 }
 0x12f   :  { %v2737_v19 = vpop.permute.xlu1 %245  ;;  %v2739_v20 = vpop.permute.xlu0 %242 }
 0x130   :  { %971 = vbcast.lane.b32.xlu1 %v2598_v9, 320  ;;  %967 = vbcast.lane.b32.xlu0 %v2598_v9, 312 }
 0x133   :  { %v2741_v21 = vpop.permute.xlu1 %251  ;;  %v2743_v22 = vpop.permute.xlu0 %248 }
 0x134   :  { %979 = vbcast.lane.b32.xlu1 %v2598_v9, 336  ;;  %975 = vbcast.lane.b32.xlu0 %v2598_v9, 328 }
 0x137   :  { %v2745_v30 = vpop.permute.xlu1 %257  ;;  %v2747_v31 = vpop.permute.xlu0 %254 }
 0x138   :  { %987 = vbcast.lane.b32.xlu1 %v2598_v9, 352  ;;  %983 = vbcast.lane.b32.xlu0 %v2598_v9, 344 }
 0x13b   :  { %v2749_v32 = vpop.permute.xlu1 %263  ;;  %v2751_v33 = vpop.permute.xlu0 %260 }
 0x13c   :  { %3607 = vst [vmem:[#allocation6_spill] sm:$0xff] %v2749_v32  ;;  %3608 = vst [vmem:[#allocation7_spill] sm:$0xff] %v2751_v33  ;;  %995 = vbcast.lane.b32.xlu1 %v2598_v9, 368  ;;  %991 = vbcast.lane.b32.xlu0 %v2598_v9, 360 }
 0x13f   :  { %v2753_v34 = vpop.permute.xlu1 %269  ;;  %v2755_v35 = vpop.permute.xlu0 %266 }
 0x140   :  { %3609 = vst [vmem:[#allocation8_spill] sm:$0xff] %v2755_v35  ;;  %999 = vbcast.lane.b32.xlu0 %v2598_v9, 376 }
 0x143   :  { %v2757_v36 = vpop.permute.xlu1 %275  ;;  %v2759_v37 = vpop.permute.xlu0 %272 }
 0x147   :  { %v2761_v38 = vpop.permute.xlu1 %281  ;;  %v2763_v39 = vpop.permute.xlu0 %278 }
 0x14b   :  { %v2765_v40 = vpop.permute.xlu1 %287  ;;  %v2767_v41 = vpop.permute.xlu0 %284 }
 0x14f   :  { %v2769_v42 = vpop.permute.xlu1 %293  ;;  %v2771_v43 = vpop.permute.xlu0 %290 }
 0x150   :  { %3610 = vst [vmem:[#allocation9_spill] sm:$0xff] %v2769_v42  ;;  %3611 = vst [vmem:[#allocation10_spill] sm:$0xff] %v2771_v43 }
 0x153   :  { %v2773_v44 = vpop.permute.xlu1 %299  ;;  %v2775_v45 = vpop.permute.xlu0 %296 }
 0x154   :  { %3612 = vst [vmem:[#allocation11_spill] sm:$0xff] %v2773_v44  ;;  %3613 = vst [vmem:[#allocation12_spill] sm:$0xff] %v2775_v45 }
 0x157   :  { %v2777_v46 = vpop.permute.xlu1 %305  ;;  %v2779_v47 = vpop.permute.xlu0 %302 }
 0x158   :  { %3614 = vst [vmem:[#allocation13_spill] sm:$0xff] %v2777_v46  ;;  %3615 = vst [vmem:[#allocation14_spill] sm:$0xff] %v2779_v47 }
 0x15b   :  { %v2781_v48 = vpop.permute.xlu1 %311  ;;  %v2783_v49 = vpop.permute.xlu0 %308 }
 0x15c   :  { %3616 = vst [vmem:[#allocation15_spill] sm:$0xff] %v2781_v48  ;;  %3617 = vst [vmem:[#allocation16_spill] sm:$0xff] %v2783_v49 }
 0x15f   :  { %v2785_v50 = vpop.permute.xlu1 %668  ;;  %v2787_v51 = vpop.permute.xlu0 %314 }
 0x160   :  { %3618 = vst [vmem:[#allocation17_spill] sm:$0xff] %v2785_v50  ;;  %3619 = vst [vmem:[#allocation18_spill] sm:$0xff] %v2787_v51 }
 0x163   :  { %v2789_v52 = vpop.permute.xlu1 %674  ;;  %v2791_v53 = vpop.permute.xlu0 %671 }
 0x164   :  { %3620 = vst [vmem:[#allocation19_spill] sm:$0xff] %v2789_v52 }
 0x167   :  { %v2793_v54 = vpop.permute.xlu1 %680  ;;  %v2795_v55 = vpop.permute.xlu0 %677 }
 0x168   :  { %3621 = vst [vmem:[#allocation20_spill] sm:$0xff] %v2793_v54  ;;  %3622 = vst [vmem:[#allocation21_spill] sm:$0xff] %v2795_v55 }
 0x16b   :  { %v2797_v56 = vpop.permute.xlu1 %686  ;;  %v2799_v57 = vpop.permute.xlu0 %683 }
 0x16c   :  { %3623 = vst [vmem:[#allocation22_spill] sm:$0xff] %v2797_v56  ;;  %3624 = vst [vmem:[#allocation23_spill] sm:$0xff] %v2799_v57 }
 0x16f   :  { %v2801_v58 = vpop.permute.xlu1 %692  ;;  %v2803_v59 = vpop.permute.xlu0 %689 }
 0x170   :  { %3625 = vst [vmem:[#allocation24_spill] sm:$0xff] %v2801_v58  ;;  %3626 = vst [vmem:[#allocation25_spill] sm:$0xff] %v2803_v59 }
 0x173   :  { %v2805_v60 = vpop.permute.xlu1 %698  ;;  %v2807_v61 = vpop.permute.xlu0 %695 }
 0x174   :  { %3627 = vst [vmem:[#allocation26_spill] sm:$0xff] %v2805_v60  ;;  %3628 = vst [vmem:[#allocation27_spill] sm:$0xff] %v2807_v61 }
 0x177   :  { %v2809_v62 = vpop.permute.xlu1 %704  ;;  %v2811_v63 = vpop.permute.xlu0 %701 }
 0x178   :  { %3629 = vst [vmem:[#allocation28_spill] sm:$0xff] %v2809_v62  ;;  %3630 = vst [vmem:[#allocation29_spill] sm:$0xff] %v2811_v63  ;;  %v2850_v63 = vsub.s32 2, %v2688_v26 }
 0x17a   :  { %3649 = vst [vmem:[#allocation48_spill] sm:$0xff] %v2850_v63 }
 0x17b   :  { %v2813_v0 = vpop.permute.xlu1 %710  ;;  %v2815_v1 = vpop.permute.xlu0 %707 }
 0x17c   :  { %3631 = vst [vmem:[#allocation30_spill] sm:$0xff] %v2813_v0  ;;  %3632 = vst [vmem:[#allocation31_spill] sm:$0xff] %v2815_v1 }
 0x17f   :  { %v2817_v2 = vpop.permute.xlu1 %716  ;;  %v2819_v3 = vpop.permute.xlu0 %713 }
 0x180   :  { %3633 = vst [vmem:[#allocation32_spill] sm:$0xff] %v2817_v2  ;;  %3634 = vst [vmem:[#allocation33_spill] sm:$0xff] %v2819_v3 }
 0x183   :  { %v2821_v4 = vpop.permute.xlu1 %722  ;;  %v2823_v5 = vpop.permute.xlu0 %719 }
 0x184   :  { %3635 = vst [vmem:[#allocation34_spill] sm:$0xff] %v2821_v4  ;;  %3636 = vst [vmem:[#allocation35_spill] sm:$0xff] %v2823_v5 }
 0x187   :  { %v2825_v6 = vpop.permute.xlu1 %728  ;;  %v2827_v7 = vpop.permute.xlu0 %725 }
 0x188   :  { %3637 = vst [vmem:[#allocation36_spill] sm:$0xff] %v2825_v6  ;;  %3638 = vst [vmem:[#allocation37_spill] sm:$0xff] %v2827_v7 }
 0x18b   :  { %v2829_v8 = vpop.permute.xlu1 %734  ;;  %v2831_v9 = vpop.permute.xlu0 %731 }
 0x18c   :  { %3639 = vst [vmem:[#allocation38_spill] sm:$0xff] %v2829_v8  ;;  %3640 = vst [vmem:[#allocation39_spill] sm:$0xff] %v2831_v9 }
 0x18f   :  { %v2833_v10 = vpop.permute.xlu1 %740  ;;  %v2835_v23 = vpop.permute.xlu0 %737 }
 0x190   :  { %3641 = vst [vmem:[#allocation40_spill] sm:$0xff] %v2833_v10  ;;  %3642 = vst [vmem:[#allocation41_spill] sm:$0xff] %v2835_v23  ;;  %v928_v10 = vrot.slane %v2685_v25, %v2850_v63 }
 0x193   :  { %v2837_v0 = vpop.permute.xlu1 %746  ;;  %v2839_v1 = vpop.permute.xlu0 %743 }
 0x194   :  { %3643 = vst [vmem:[#allocation42_spill] sm:$0xff] %v2837_v0  ;;  %3644 = vst [vmem:[#allocation43_spill] sm:$0xff] %v2839_v1 }
 0x197   :  { %v2841_v3 = vpop.permute.xlu1 %752  ;;  %v2843_v51 = vpop.permute.xlu0 %749 }
 0x198   :  { %3645 = vst [vmem:[#allocation44_spill] sm:$0xff] %v2841_v3  ;;  %3646 = vst [vmem:[#allocation45_spill] sm:$0xff] %v2843_v51 }
 0x19b   :  { %v2845_v62 = vpop.permute.xlu1 %758  ;;  %v2847_v48 = vpop.permute.xlu0 %755 }
 0x19c   :  { %3647 = vst [vmem:[#allocation46_spill] sm:$0xff] %v2845_v62  ;;  %3648 = vst [vmem:[#allocation47_spill] sm:$0xff] %v2847_v48 }
 0x19f   :  { %v940_v35 = vpop.permute.xlu1 %939  ;;  %v2854_v60 = vpop.permute.xlu0 %761 }
 0x1a0   :  { %3650 = vst [vmem:[#allocation49_spill] sm:$0xff] %v2854_v60  ;;  %v1017_v0 = vmul.f32 %v940_v35, %v928_v10 }
 0x1a2   :  { %1082 = vperm.xlu1 %2605, %v1017_v0  }
 0x1a3   :  { %v948_v1 = vpop.permute.xlu1 %947  ;;  %v944_v23 = vpop.permute.xlu0 %943 }
 0x1a4   :  { %v1019_v3 = vmul.f32 %v948_v1, %v928_v10  ;;  %v1018_v49 = vmul.f32 %v944_v23, %v928_v10 }
 0x1a6   :  { %1088 = vperm.xlu1 %2605, %v1019_v3   ;;  %1085 = vperm.xlu0 %2604, %v1018_v49  }
 0x1a7   :  { %v956_v62 = vpop.permute.xlu1 %955  ;;  %v952_v51 = vpop.permute.xlu0 %951 }
 0x1a8   :  { %v1021_v48 = vmul.f32 %v956_v62, %v928_v10  ;;  %v1020_v8 = vmul.f32 %v952_v51, %v928_v10 }
 0x1aa   :  { %1094 = vperm.xlu1 %2605, %v1021_v48   ;;  %1091 = vperm.xlu0 %2604, %v1020_v8  }
 0x1ab   :  { %v964_v61 = vpop.permute.xlu1 %963  ;;  %v960_v46 = vpop.permute.xlu0 %959 }
 0x1ac   :  { %v1023_v25 = vmul.f32 %v964_v61, %v928_v10  ;;  %v1022_v58 = vmul.f32 %v960_v46, %v928_v10 }
 0x1ae   :  { %1100 = vperm.xlu1 %2605, %v1023_v25   ;;  %1097 = vperm.xlu0 %2604, %v1022_v58  }
 0x1af   :  { %v972_v60 = vpop.permute.xlu1 %971  ;;  %v968_v0 = vpop.permute.xlu0 %967 }
 0x1b0   :  { %v1025_v9 = vmul.f32 %v972_v60, %v928_v10  ;;  %v1024_v6 = vmul.f32 %v968_v0, %v928_v10 }
 0x1b2   :  { %1106 = vperm.xlu1 %2605, %v1025_v9   ;;  %1103 = vperm.xlu0 %2604, %v1024_v6   ;;  %v932_v9 = vrot.slane %v2692_v28, %v2850_v63 }
 0x1b3   :  { %v980_v3 = vpop.permute.xlu1 %979  ;;  %v976_v49 = vpop.permute.xlu0 %975 }
 0x1b4   :  { %v1027_v47 = vmul.f32 %v980_v3, %v928_v10  ;;  %v1026_v59 = vmul.f32 %v976_v49, %v928_v10  ;;  %v1033_v33 = vmul.f32 %v940_v35, %v932_v9  ;;  %v1039_v2 = vmul.f32 %v964_v61, %v932_v9 }
 0x1b5   :  { %v1038_v57 = vmul.f32 %v960_v46, %v932_v9  ;;  %v1041_v28 = vmul.f32 %v972_v60, %v932_v9  ;;  %v1043_v35 = vmul.f32 %v980_v3, %v932_v9  ;;  %v2599_v46 = vld [vmem:[%s3591_s2 + $0x3] ss:$0 sm:$0xff] }
 0x1b6   :  { %1112 = vperm.xlu1 %2605, %v1027_v47   ;;  %1109 = vperm.xlu0 %2604, %v1026_v59   ;;  %v1035_v47 = vmul.f32 %v948_v1, %v932_v9  ;;  %v1034_v59 = vmul.f32 %v944_v23, %v932_v9 }
 0x1b7   :  { %v988_v48 = vpop.permute.xlu1 %987  ;;  %v984_v8 = vpop.permute.xlu0 %983 }
 0x1b8   :  { %v1029_v44 = vmul.f32 %v988_v48, %v928_v10  ;;  %v1028_v56 = vmul.f32 %v984_v8, %v928_v10  ;;  %v1044_v23 = vmul.f32 %v984_v8, %v932_v9 }
 0x1ba   :  { %1118 = vperm.xlu1 %2605, %v1029_v44   ;;  %1115 = vperm.xlu0 %2604, %v1028_v56   ;;  %v1037_v44 = vmul.f32 %v956_v62, %v932_v9  ;;  %v1036_v56 = vmul.f32 %v952_v51, %v932_v9 }
 0x1bb   :  { %v996_v25 = vpop.permute.xlu1 %995  ;;  %v992_v58 = vpop.permute.xlu0 %991 }
 0x1bc   :  { %v1031_v7 = vmul.f32 %v996_v25, %v928_v10  ;;  %v1030_v4 = vmul.f32 %v992_v58, %v928_v10  ;;  %v1046_v51 = vmul.f32 %v992_v58, %v932_v9 }
 0x1be   :  { %1124 = vperm.xlu1 %2605, %v1031_v7   ;;  %1121 = vperm.xlu0 %2604, %v1030_v4   ;;  %v1040_v7 = vmul.f32 %v968_v0, %v932_v9  ;;  %v1042_v4 = vmul.f32 %v976_v49, %v932_v9 }
 0x1bf   :  { %v1000_v6 = vpop.permute.xlu0 %999 }
 0x1c0   :  { %v1032_v32 = vmul.f32 %v1000_v6, %v928_v10 }
 0x1c2   :  { %1130 = vperm.xlu1 %2605, %v1033_v33   ;;  %1127 = vperm.xlu0 %2604, %v1032_v32   ;;  %v1045_v32 = vmul.f32 %v988_v48, %v932_v9  ;;  %v1047_v33 = vmul.f32 %v996_v25, %v932_v9 }
 0x1c6   :  { %1136 = vperm.xlu1 %2605, %v1035_v47   ;;  %1133 = vperm.xlu0 %2604, %v1034_v59  }
 0x1ca   :  { %1142 = vperm.xlu1 %2605, %v1037_v44   ;;  %1139 = vperm.xlu0 %2604, %v1036_v56  }
 0x1ce   :  { %1148 = vperm.xlu1 %2605, %v1039_v2   ;;  %1145 = vperm.xlu0 %2604, %v1038_v57   ;;  %v1048_v57 = vmul.f32 %v1000_v6, %v932_v9 }
 0x1d2   :  { %1154 = vperm.xlu1 %2605, %v1041_v28   ;;  %1151 = vperm.xlu0 %2604, %v1040_v7  }
 0x1d6   :  { %1160 = vperm.xlu1 %2605, %v1043_v35   ;;  %1157 = vperm.xlu0 %2604, %v1042_v4  }
 0x1da   :  { %1166 = vperm.xlu1 %2605, %v1045_v32   ;;  %1163 = vperm.xlu0 %2604, %v1044_v23  }
 0x1de   :  { %1172 = vperm.xlu1 %2605, %v1047_v33   ;;  %1169 = vperm.xlu0 %2604, %v1046_v51  }
 0x1e2   :  { %1175 = vperm.xlu0 %2604, %v1048_v57   ;;  %1353 = vbcast.lane.b32.xlu1 %v2599_v46, 256 }
 0x1e6   :  { %1361 = vbcast.lane.b32.xlu1 %v2599_v46, 272  ;;  %1357 = vbcast.lane.b32.xlu0 %v2599_v46, 264 }
 0x1ea   :  { %1369 = vbcast.lane.b32.xlu1 %v2599_v46, 288  ;;  %1365 = vbcast.lane.b32.xlu0 %v2599_v46, 280 }
 0x1ee   :  { %1377 = vbcast.lane.b32.xlu1 %v2599_v46, 304  ;;  %1373 = vbcast.lane.b32.xlu0 %v2599_v46, 296 }
 0x1f2   :  { %1385 = vbcast.lane.b32.xlu1 %v2599_v46, 320  ;;  %1381 = vbcast.lane.b32.xlu0 %v2599_v46, 312 }
 0x1f6   :  { %1393 = vbcast.lane.b32.xlu1 %v2599_v46, 336  ;;  %1389 = vbcast.lane.b32.xlu0 %v2599_v46, 328 }
 0x1fa   :  { %1401 = vbcast.lane.b32.xlu1 %v2599_v46, 352  ;;  %1397 = vbcast.lane.b32.xlu0 %v2599_v46, 344 }
 0x1fe   :  { %1409 = vbcast.lane.b32.xlu1 %v2599_v46, 368  ;;  %1405 = vbcast.lane.b32.xlu0 %v2599_v46, 360 }
 0x202   :  { %1413 = vbcast.lane.b32.xlu0 %v2599_v46, 376 }
 0x221   :  { %v2861_v60 = vpop.permute.xlu1 %1082 }
 0x222   :  { %3651 = vst [vmem:[#allocation50_spill] sm:$0xff] %v2861_v60 }
 0x225   :  { %v2863_v61 = vpop.permute.xlu1 %1088  ;;  %v2865_v62 = vpop.permute.xlu0 %1085 }
 0x226   :  { %3652 = vst [vmem:[#allocation51_spill] sm:$0xff] %v2863_v61  ;;  %3653 = vst [vmem:[#allocation52_spill] sm:$0xff] %v2865_v62 }
 0x229   :  { %v2867_v1 = vpop.permute.xlu1 %1094  ;;  %v2869_v2 = vpop.permute.xlu0 %1091 }
 0x22a   :  { %3654 = vst [vmem:[#allocation53_spill] sm:$0xff] %v2867_v1  ;;  %3655 = vst [vmem:[#allocation54_spill] sm:$0xff] %v2869_v2 }
 0x22d   :  { %v2871_v10 = vpop.permute.xlu1 %1100  ;;  %v2873_v0 = vpop.permute.xlu0 %1097 }
 0x22e   :  { %3656 = vst [vmem:[#allocation55_spill] sm:$0xff] %v2871_v10  ;;  %3657 = vst [vmem:[#allocation56_spill] sm:$0xff] %v2873_v0 }
 0x231   :  { %v2875_v3 = vpop.permute.xlu1 %1106  ;;  %v2877_v49 = vpop.permute.xlu0 %1103 }
 0x232   :  { %3658 = vst [vmem:[#allocation57_spill] sm:$0xff] %v2875_v3  ;;  %3659 = vst [vmem:[#allocation58_spill] sm:$0xff] %v2877_v49 }
 0x235   :  { %v2879_v48 = vpop.permute.xlu1 %1112  ;;  %v2881_v8 = vpop.permute.xlu0 %1109 }
 0x236   :  { %3660 = vst [vmem:[#allocation59_spill] sm:$0xff] %v2879_v48  ;;  %3661 = vst [vmem:[#allocation60_spill] sm:$0xff] %v2881_v8 }
 0x239   :  { %v2883_v25 = vpop.permute.xlu1 %1118  ;;  %v2885_v58 = vpop.permute.xlu0 %1115 }
 0x23a   :  { %3662 = vst [vmem:[#allocation61_spill] sm:$0xff] %v2883_v25  ;;  %3663 = vst [vmem:[#allocation62_spill] sm:$0xff] %v2885_v58 }
 0x23d   :  { %v2887_v9 = vpop.permute.xlu1 %1124  ;;  %v2889_v6 = vpop.permute.xlu0 %1121 }
 0x23e   :  { %3664 = vst [vmem:[#allocation63_spill] sm:$0xff] %v2887_v9  ;;  %3665 = vst [vmem:[#allocation64_spill] sm:$0xff] %v2889_v6  ;;  %v1342_v9 = vrot.slane %v2683_v24, %v2695_v29 }
 0x241   :  { %v2891_v47 = vpop.permute.xlu1 %1130  ;;  %v2893_v59 = vpop.permute.xlu0 %1127 }
 0x242   :  { %3666 = vst [vmem:[#allocation65_spill] sm:$0xff] %v2891_v47  ;;  %3667 = vst [vmem:[#allocation66_spill] sm:$0xff] %v2893_v59 }
 0x245   :  { %v2895_v44 = vpop.permute.xlu1 %1136  ;;  %v2897_v56 = vpop.permute.xlu0 %1133 }
 0x246   :  { %3668 = vst [vmem:[#allocation67_spill] sm:$0xff] %v2895_v44  ;;  %3669 = vst [vmem:[#allocation68_spill] sm:$0xff] %v2897_v56 }
 0x249   :  { %v2899_v28 = vpop.permute.xlu1 %1142  ;;  %v2901_v7 = vpop.permute.xlu0 %1139 }
 0x24a   :  { %3670 = vst [vmem:[#allocation69_spill] sm:$0xff] %v2899_v28  ;;  %3671 = vst [vmem:[#allocation70_spill] sm:$0xff] %v2901_v7 }
 0x24d   :  { %v2903_v35 = vpop.permute.xlu1 %1148  ;;  %v2905_v4 = vpop.permute.xlu0 %1145 }
 0x24e   :  { %3672 = vst [vmem:[#allocation71_spill] sm:$0xff] %v2903_v35  ;;  %3673 = vst [vmem:[#allocation72_spill] sm:$0xff] %v2905_v4 }
 0x251   :  { %v2907_v32 = vpop.permute.xlu1 %1154  ;;  %v2909_v23 = vpop.permute.xlu0 %1151 }
 0x252   :  { %3674 = vst [vmem:[#allocation73_spill] sm:$0xff] %v2907_v32  ;;  %3675 = vst [vmem:[#allocation74_spill] sm:$0xff] %v2909_v23 }
 0x255   :  { %v2911_v33 = vpop.permute.xlu1 %1160  ;;  %v2913_v51 = vpop.permute.xlu0 %1157 }
 0x256   :  { %3676 = vst [vmem:[#allocation75_spill] sm:$0xff] %v2911_v33  ;;  %3677 = vst [vmem:[#allocation76_spill] sm:$0xff] %v2913_v51 }
 0x259   :  { %v2915_v46 = vpop.permute.xlu1 %1166  ;;  %v2917_v57 = vpop.permute.xlu0 %1163 }
 0x25a   :  { %3678 = vst [vmem:[#allocation77_spill] sm:$0xff] %v2915_v46  ;;  %3679 = vst [vmem:[#allocation78_spill] sm:$0xff] %v2917_v57 }
 0x25d   :  { %v2919_v63 = vpop.permute.xlu1 %1172  ;;  %v2921_v59 = vpop.permute.xlu0 %1169 }
 0x25e   :  { %3680 = vst [vmem:[#allocation79_spill] sm:$0xff] %v2919_v63  ;;  %3681 = vst [vmem:[#allocation80_spill] sm:$0xff] %v2921_v59 }
 0x261   :  { %v1354_v6 = vpop.permute.xlu1 %1353  ;;  %v2925_v25 = vpop.permute.xlu0 %1175 }
 0x262   :  { %3682 = vst [vmem:[#allocation81_spill] sm:$0xff] %v2925_v25  ;;  %v1431_v58 = vmul.f32 %v1354_v6, %v1342_v9 }
 0x264   :  { %1496 = vperm.xlu1 %2605, %v1431_v58  }
 0x265   :  { %v1362_v48 = vpop.permute.xlu1 %1361  ;;  %v1358_v8 = vpop.permute.xlu0 %1357 }
 0x266   :  { %v1433_v33 = vmul.f32 %v1362_v48, %v1342_v9  ;;  %v1432_v3 = vmul.f32 %v1358_v8, %v1342_v9 }
 0x268   :  { %1502 = vperm.xlu1 %2605, %v1433_v33   ;;  %1499 = vperm.xlu0 %2604, %v1432_v3  }
 0x269   :  { %v1370_v46 = vpop.permute.xlu1 %1369  ;;  %v1366_v57 = vpop.permute.xlu0 %1365 }
 0x26a   :  { %v1435_v51 = vmul.f32 %v1370_v46, %v1342_v9  ;;  %v1434_v63 = vmul.f32 %v1366_v57, %v1342_v9 }
 0x26c   :  { %1508 = vperm.xlu1 %2605, %v1435_v51   ;;  %1505 = vperm.xlu0 %2604, %v1434_v63  }
 0x26d   :  { %v1378_v59 = vpop.permute.xlu1 %1377  ;;  %v1374_v32 = vpop.permute.xlu0 %1373 }
 0x26e   :  { %v1437_v49 = vmul.f32 %v1378_v59, %v1342_v9  ;;  %v1436_v23 = vmul.f32 %v1374_v32, %v1342_v9 }
 0x270   :  { %1514 = vperm.xlu1 %2605, %v1437_v49   ;;  %1511 = vperm.xlu0 %2604, %v1436_v23  }
 0x271   :  { %v1386_v25 = vpop.permute.xlu1 %1385  ;;  %v1382_v58 = vpop.permute.xlu0 %1381 }
 0x272   :  { %v1439_v10 = vmul.f32 %v1386_v25, %v1342_v9  ;;  %v1438_v35 = vmul.f32 %v1382_v58, %v1342_v9 }
 0x274   :  { %1520 = vperm.xlu1 %2605, %v1439_v10   ;;  %1517 = vperm.xlu0 %2604, %v1438_v35   ;;  %v1346_v10 = vrot.slane %v2690_v27, %v2695_v29 }
 0x275   :  { %v1394_v33 = vpop.permute.xlu1 %1393  ;;  %v1390_v3 = vpop.permute.xlu0 %1389 }
 0x276   :  { %v1441_v0 = vmul.f32 %v1394_v33, %v1342_v9  ;;  %v1440_v4 = vmul.f32 %v1390_v3, %v1342_v9  ;;  %v1447_v7 = vmul.f32 %v1354_v6, %v1346_v10  ;;  %v1453_v60 = vmul.f32 %v1378_v59, %v1346_v10 }
 0x277   :  { %v1452_v47 = vmul.f32 %v1374_v32, %v1346_v10  ;;  %v1455_v29 = vmul.f32 %v1386_v25, %v1346_v10 }
 0x278   :  { %1526 = vperm.xlu1 %2605, %v1441_v0   ;;  %1523 = vperm.xlu0 %2604, %v1440_v4   ;;  %v1449_v0 = vmul.f32 %v1362_v48, %v1346_v10  ;;  %v1448_v4 = vmul.f32 %v1358_v8, %v1346_v10 }
 0x279   :  { %v1402_v51 = vpop.permute.xlu1 %1401  ;;  %v1398_v63 = vpop.permute.xlu0 %1397 }
 0x27a   :  { %v1443_v1 = vmul.f32 %v1402_v51, %v1342_v9  ;;  %v1442_v28 = vmul.f32 %v1398_v63, %v1342_v9  ;;  %v1459_v48 = vmul.f32 %v1402_v51, %v1346_v10  ;;  %v1458_v8 = vmul.f32 %v1398_v63, %v1346_v10 }
 0x27c   :  { %1532 = vperm.xlu1 %2605, %v1443_v1   ;;  %1529 = vperm.xlu0 %2604, %v1442_v28   ;;  %v1451_v1 = vmul.f32 %v1370_v46, %v1346_v10  ;;  %v1450_v28 = vmul.f32 %v1366_v57, %v1346_v10 }
 0x27d   :  { %v1410_v49 = vpop.permute.xlu1 %1409  ;;  %v1406_v23 = vpop.permute.xlu0 %1405 }
 0x27e   :  { %v1445_v2 = vmul.f32 %v1410_v49, %v1342_v9  ;;  %v1444_v61 = vmul.f32 %v1406_v23, %v1342_v9  ;;  %v1461_v6 = vmul.f32 %v1410_v49, %v1346_v10 }
 0x280   :  { %1538 = vperm.xlu1 %2605, %v1445_v2   ;;  %1535 = vperm.xlu0 %2604, %v1444_v61   ;;  %v1454_v2 = vmul.f32 %v1382_v58, %v1346_v10  ;;  %v1457_v61 = vmul.f32 %v1394_v33, %v1346_v10 }
 0x281   :  { %v1414_v35 = vpop.permute.xlu0 %1413 }
 0x282   :  { %v1446_v44 = vmul.f32 %v1414_v35, %v1342_v9  ;;  %v1456_v9 = vmul.f32 %v1390_v3, %v1346_v10  ;;  %v1462_v25 = vmul.f32 %v1414_v35, %v1346_v10 }
 0x284   :  { %1544 = vperm.xlu1 %2605, %v1447_v7   ;;  %1541 = vperm.xlu0 %2604, %v1446_v44   ;;  %v1460_v44 = vmul.f32 %v1406_v23, %v1346_v10  ;;  %v3696_v10 = vlaneseq }
 0x286   :  { %v2959_v35 = vand.u32 127, %v3696_v10 }
 0x288   :  { %1550 = vperm.xlu1 %2605, %v1449_v0   ;;  %1547 = vperm.xlu0 %2604, %v1448_v4  }
 0x28c   :  { %1556 = vperm.xlu1 %2605, %v1451_v1   ;;  %1553 = vperm.xlu0 %2604, %v1450_v28   ;;  %v322_v1 = vadd.s32 4294967288, %v2959_v35  ;;  %v329_v28 = vadd.s32 4294967280, %v2959_v35 }
 0x290   :  { %1562 = vperm.xlu1 %2605, %v1453_v60   ;;  %1559 = vperm.xlu0 %2604, %v1452_v47   ;;  %v2600_v60 = vld [vmem:[%s3591_s2 + $0x4] ss:$0 sm:$0xff] }
 0x294   :  { %1568 = vperm.xlu1 %2605, %v1455_v29   ;;  %1565 = vperm.xlu0 %2604, %v1454_v2  }
 0x298   :  { %1574 = vperm.xlu1 %2605, %v1457_v61   ;;  %1571 = vperm.xlu0 %2604, %v1456_v9   ;;  %v2970_v61 = vsub.s32 %v322_v1, %v2688_v26  ;;  %v2974_v9 = vsub.s32 %v2959_v35, %v2688_v26 }
 0x29c   :  { %1580 = vperm.xlu1 %2605, %v1459_v48   ;;  %1577 = vperm.xlu0 %2604, %v1458_v8   ;;  %v336_v48 = vadd.s32 4294967272, %v2959_v35  ;;  %v2978_v8 = vsub.s32 %v329_v28, %v2688_v26 }
 0x2a0   :  { %1586 = vperm.xlu1 %2605, %v1461_v6   ;;  %1583 = vperm.xlu0 %2604, %v1460_v44   ;;  %v343_v6 = vadd.s32 4294967264, %v2959_v35 }
 0x2a2   :  { %v2990_v28 = vsub.s32 %v343_v6, %v2688_v26 }
 0x2a4   :  { %1589 = vperm.xlu0 %2604, %v1462_v25   ;;  %1767 = vbcast.lane.b32.xlu1 %v2600_v60, 256 }
 0x2a8   :  { %1775 = vbcast.lane.b32.xlu1 %v2600_v60, 272  ;;  %1771 = vbcast.lane.b32.xlu0 %v2600_v60, 264 }
 0x2ac   :  { %1783 = vbcast.lane.b32.xlu1 %v2600_v60, 288  ;;  %1779 = vbcast.lane.b32.xlu0 %v2600_v60, 280 }
 0x2b0   :  { %1791 = vbcast.lane.b32.xlu1 %v2600_v60, 304  ;;  %1787 = vbcast.lane.b32.xlu0 %v2600_v60, 296 }
 0x2b4   :  { %1799 = vbcast.lane.b32.xlu1 %v2600_v60, 320  ;;  %1795 = vbcast.lane.b32.xlu0 %v2600_v60, 312 }
 0x2b8   :  { %1807 = vbcast.lane.b32.xlu1 %v2600_v60, 336  ;;  %1803 = vbcast.lane.b32.xlu0 %v2600_v60, 328 }
 0x2bc   :  { %1815 = vbcast.lane.b32.xlu1 %v2600_v60, 352  ;;  %1811 = vbcast.lane.b32.xlu0 %v2600_v60, 344 }
 0x2c0   :  { %1823 = vbcast.lane.b32.xlu1 %v2600_v60, 368  ;;  %1819 = vbcast.lane.b32.xlu0 %v2600_v60, 360 }
 0x2c4   :  { %1827 = vbcast.lane.b32.xlu0 %v2600_v60, 376 }
 0x2e3   :  { %v2932_v47 = vpop.permute.xlu1 %1496 }
 0x2e4   :  { %3683 = vst [vmem:[#allocation82_spill] sm:$0xff] %v2932_v47 }
 0x2e7   :  { %v2934_v59 = vpop.permute.xlu1 %1502  ;;  %v2936_v7 = vpop.permute.xlu0 %1499 }
 0x2e8   :  { %3684 = vst [vmem:[#allocation83_spill] sm:$0xff] %v2934_v59  ;;  %3685 = vst [vmem:[#allocation84_spill] sm:$0xff] %v2936_v7 }
 0x2eb   :  { %v2938_v32 = vpop.permute.xlu1 %1508  ;;  %v2940_v46 = vpop.permute.xlu0 %1505 }
 0x2ec   :  { %3686 = vst [vmem:[#allocation85_spill] sm:$0xff] %v2938_v32  ;;  %3687 = vst [vmem:[#allocation86_spill] sm:$0xff] %v2940_v46 }
 0x2ef   :  { %v2942_v57 = vpop.permute.xlu1 %1514  ;;  %v2944_v58 = vpop.permute.xlu0 %1511 }
 0x2f0   :  { %3688 = vst [vmem:[#allocation87_spill] sm:$0xff] %v2942_v57  ;;  %3689 = vst [vmem:[#allocation88_spill] sm:$0xff] %v2944_v58 }
 0x2f3   :  { %v2946_v33 = vpop.permute.xlu1 %1520  ;;  %v2948_v3 = vpop.permute.xlu0 %1517 }
 0x2f4   :  { %3690 = vst [vmem:[#allocation89_spill] sm:$0xff] %v2946_v33  ;;  %3691 = vst [vmem:[#allocation90_spill] sm:$0xff] %v2948_v3 }
 0x2f7   :  { %v2950_v51 = vpop.permute.xlu1 %1526  ;;  %v2952_v63 = vpop.permute.xlu0 %1523 }
 0x2f8   :  { %3692 = vst [vmem:[#allocation91_spill] sm:$0xff] %v2950_v51  ;;  %3693 = vst [vmem:[#allocation92_spill] sm:$0xff] %v2952_v63  ;;  %v371_v63 = vadd.s32 4294967232, %v2959_v35 }
 0x2fb   :  { %v2954_v49 = vpop.permute.xlu1 %1532  ;;  %v2956_v23 = vpop.permute.xlu0 %1529 }
 0x2fc   :  { %3694 = vst [vmem:[#allocation93_spill] sm:$0xff] %v2954_v49  ;;  %3695 = vst [vmem:[#allocation94_spill] sm:$0xff] %v2956_v23  ;;  %v357_v49 = vadd.s32 4294967248, %v2959_v35 }
 0x2ff   :  { %v2961_v0 = vpop.permute.xlu1 %1538  ;;  %v2963_v4 = vpop.permute.xlu0 %1535 }
 0x300   :  { %3697 = vst [vmem:[#allocation95_spill] sm:$0xff] %v2961_v0  ;;  %3698 = vst [vmem:[#allocation96_spill] sm:$0xff] %v2963_v4  ;;  %v350_v0 = vadd.s32 4294967256, %v2959_v35 }
 0x303   :  { %v1545_v29 = vpop.permute.xlu1 %1544  ;;  %v2967_v2 = vpop.permute.xlu0 %1541 }
 0x304   :  { %3699 = vst [vmem:[#allocation97_spill] sm:$0xff] %v2967_v2  ;;  %v1673_v25 = vrot.slane %v1545_v29, %v2974_v9  ;;  %v2985_v2 = vsub.s32 %v336_v48, %v2688_v26 }
 0x307   :  { %v1551_v44 = vpop.permute.xlu1 %1550  ;;  %v1548_v60 = vpop.permute.xlu0 %1547 }
 0x308   :  { %v1677_v10 = vrot.slane %v1548_v60, %v2970_v61  ;;  %v1682_v1 = vrot.slane %v1551_v44, %v2978_v8  ;;  %v2997_v60 = vsub.s32 %v350_v0, %v2688_v26 }
 0x30a   :  { %v1678_v4 = vsel %vm327_vm2, %v1677_v10, %v1673_v25  ;;  %v364_v25 = vadd.s32 4294967240, %v2959_v35  ;;  %v3002_v10 = vsub.s32 %v357_v49, %v2688_v26 }
 0x30b   :  { %v1557_v23 = vpop.permute.xlu1 %1556  ;;  %v1554_v51 = vpop.permute.xlu0 %1553  ;;  %v1683_v48 = vsel %vm334_vm3, %v1682_v1, %v1678_v4  ;;  %v378_v1 = vadd.s32 4294967224, %v2959_v35 }
 0x30c   :  { %v1687_v29 = vrot.slane %v1554_v51, %v2985_v2  ;;  %v1692_v44 = vrot.slane %v1557_v23, %v2990_v28  ;;  %v3009_v4 = vsub.s32 %v364_v25, %v2688_v26 }
 0x30d   :  { %v3021_v25 = vsub.s32 %v378_v1, %v2688_v26 }
 0x30e   :  { %v1688_v6 = vsel %vm341_vm4, %v1687_v29, %v1683_v48  ;;  %v3014_v29 = vsub.s32 %v371_v63, %v2688_v26  ;;  %v385_v48 = vadd.s32 4294967216, %v2959_v35 }
 0x30f   :  { %v1563_v33 = vpop.permute.xlu1 %1562  ;;  %v1560_v3 = vpop.permute.xlu0 %1559  ;;  %v1693_v0 = vsel %vm348_vm5, %v1692_v44, %v1688_v6  ;;  %v392_v6 = vadd.s32 4294967208, %v2959_v35 }
 0x310   :  { %v1697_v51 = vrot.slane %v1560_v3, %v2997_v60  ;;  %v1702_v23 = vrot.slane %v1563_v33, %v3002_v10 }
 0x311   :  { %v3033_v1 = vsub.s32 %v392_v6, %v2688_v26 }
 0x312   :  { %v1698_v49 = vsel %vm355_vm6, %v1697_v51, %v1693_v0  ;;  %v3026_v51 = vsub.s32 %v385_v48, %v2688_v26  ;;  %v399_v0 = vadd.s32 4294967200, %v2959_v35 }
 0x313   :  { %v1569_v57 = vpop.permute.xlu1 %1568  ;;  %v1566_v58 = vpop.permute.xlu0 %1565  ;;  %v1703_v44 = vsel %vm362_vm7, %v1702_v23, %v1698_v49  ;;  %v406_v49 = vadd.s32 4294967192, %v2959_v35 }
 0x314   :  { %v1707_v3 = vrot.slane %v1566_v58, %v3009_v4  ;;  %v1712_v33 = vrot.slane %v1569_v57, %v3014_v29 }
 0x315   :  { %v3045_v6 = vsub.s32 %v406_v49, %v2688_v26  ;;  %v1756_v49 = vrot.slane %v2683_v24, %v2708_v18 }
 0x316   :  { %v1708_v63 = vsel %vm369_vm8, %v1707_v3, %v1703_v44  ;;  %v3038_v3 = vsub.s32 %v399_v0, %v2688_v26  ;;  %v413_v44 = vadd.s32 4294967184, %v2959_v35 }
 0x317   :  { %v1575_v32 = vpop.permute.xlu1 %1574  ;;  %v1572_v46 = vpop.permute.xlu0 %1571  ;;  %v1713_v23 = vsel %vm376_vm9, %v1712_v33, %v1708_v63  ;;  %3700 = vst [vmem:[#allocation98_spill] sm:$0xff] %v3045_v6  ;;  %v420_v63 = vadd.s32 4294967176, %v2959_v35 }
 0x318   :  { %v1717_v58 = vrot.slane %v1572_v46, %v3021_v25  ;;  %v1722_v57 = vrot.slane %v1575_v32, %v3026_v51 }
 0x319   :  { %v3058_v35 = vsub.s32 %v420_v63, %v2688_v26 }
 0x31a   :  { %v1718_v48 = vsel %vm383_vm10, %v1717_v58, %v1713_v23  ;;  %v3050_v58 = vsub.s32 %v413_v44, %v2688_v26 }
 0x31b   :  { %v1581_v59 = vpop.permute.xlu1 %1580  ;;  %v1578_v47 = vpop.permute.xlu0 %1577  ;;  %v1723_v33 = vsel %vm390_vm11, %v1722_v57, %v1718_v48  ;;  %3702 = vst [vmem:[#allocation100_spill] sm:$0xff] %v3058_v35 }
 0x31c   :  { %v1727_v46 = vrot.slane %v1578_v47, %v3033_v1  ;;  %v1732_v32 = vrot.slane %v1581_v59, %v3038_v3  ;;  %3701 = vst [vmem:[#allocation99_spill] sm:$0xff] %v3050_v58 }
 0x31e   :  { %v1728_v0 = vsel %vm397_vm12, %v1727_v46, %v1723_v33 }
 0x31f   :  { %v1587_v23 = vpop.permute.xlu1 %1586  ;;  %v1584_v7 = vpop.permute.xlu0 %1583  ;;  %v1733_v57 = vsel %vm404_vm13, %v1732_v32, %v1728_v0 }
 0x320   :  { %v1737_v47 = vrot.slane %v1584_v7, %v3045_v6  ;;  %v1742_v59 = vrot.slane %v1587_v23, %v3050_v58 }
 0x322   :  { %v1738_v48 = vsel %vm411_vm14, %v1737_v47, %v1733_v57 }
 0x323   :  { %v1768_v44 = vpop.permute.xlu1 %1767  ;;  %v1590_v46 = vpop.permute.xlu0 %1589  ;;  %v1743_v7 = vsel %vm418_vm15, %v1742_v59, %v1738_v48 }
 0x324   :  { %v1845_v33 = vmul.f32 %v1768_v44, %v1756_v49  ;;  %v1747_v62 = vrot.slane %v1590_v46, %v3058_v35 }
 0x326   :  { %v3064_v23 = vsel %vm425_vm0, %v1747_v62, %v1743_v7  ;;  %1910 = vperm.xlu1 %2605, %v1845_v33  }
 0x327   :  { %3703 = vst [vmem:[#allocation101_spill] sm:$0xff] %v3064_v23  ;;  %v1776_v32 = vpop.permute.xlu1 %1775  ;;  %v1772_v0 = vpop.permute.xlu0 %1771 }
 0x328   :  { %v1847_v24 = vmul.f32 %v1776_v32, %v1756_v49  ;;  %v1846_v26 = vmul.f32 %v1772_v0, %v1756_v49 }
 0x32a   :  { %1916 = vperm.xlu1 %2605, %v1847_v24   ;;  %1913 = vperm.xlu0 %2604, %v1846_v26  }
 0x32b   :  { %v1784_v63 = vpop.permute.xlu1 %1783  ;;  %v1780_v47 = vpop.permute.xlu0 %1779 }
 0x32c   :  { %v1849_v57 = vmul.f32 %v1784_v63, %v1756_v49  ;;  %v1848_v56 = vmul.f32 %v1780_v47, %v1756_v49 }
 0x32e   :  { %1922 = vperm.xlu1 %2605, %v1849_v57   ;;  %1919 = vperm.xlu0 %2604, %v1848_v56  }
 0x32f   :  { %v1792_v46 = vpop.permute.xlu1 %1791  ;;  %v1788_v35 = vpop.permute.xlu0 %1787 }
 0x330   :  { %v1851_v6 = vmul.f32 %v1792_v46, %v1756_v49  ;;  %v1850_v59 = vmul.f32 %v1788_v35, %v1756_v49 }
 0x332   :  { %1928 = vperm.xlu1 %2605, %v1851_v6   ;;  %1925 = vperm.xlu0 %2604, %v1850_v59  }
 0x333   :  { %v1800_v62 = vpop.permute.xlu1 %1799  ;;  %v1796_v48 = vpop.permute.xlu0 %1795 }
 0x334   :  { %v1853_v33 = vmul.f32 %v1800_v62, %v1756_v49  ;;  %v1852_v7 = vmul.f32 %v1796_v48, %v1756_v49 }
 0x336   :  { %1934 = vperm.xlu1 %2605, %v1853_v33   ;;  %1931 = vperm.xlu0 %2604, %v1852_v7   ;;  %v1760_v33 = vrot.slane %v2690_v27, %v2708_v18 }
 0x337   :  { %v1808_v24 = vpop.permute.xlu1 %1807  ;;  %v1804_v26 = vpop.permute.xlu0 %1803 }
 0x338   :  { %v1855_v23 = vmul.f32 %v1808_v24, %v1756_v49  ;;  %v1854_v58 = vmul.f32 %v1804_v26, %v1756_v49  ;;  %v1861_v55 = vmul.f32 %v1768_v44, %v1760_v33  ;;  %v1867_v43 = vmul.f32 %v1792_v46, %v1760_v33 }
 0x339   :  { %v1866_v50 = vmul.f32 %v1788_v35, %v1760_v33  ;;  %v1869_v18 = vmul.f32 %v1800_v62, %v1760_v33  ;;  %v326_v35 = vrot.slane %v2723_v11, %v2970_v61  ;;  %v354_v11 = vrot.slane %v2735_v17, %v2997_v60 }
 0x33a   :  { %1940 = vperm.xlu1 %2605, %v1855_v23   ;;  %1937 = vperm.xlu0 %2604, %v1854_v58   ;;  %v1863_v58 = vmul.f32 %v1776_v32, %v1760_v33  ;;  %v1862_v23 = vmul.f32 %v1772_v0, %v1760_v33  ;;  %v321_v0 = vrot.slane %v2725_v12, %v2974_v9 }
 0x33b   :  { %v1816_v57 = vpop.permute.xlu1 %1815  ;;  %v1812_v56 = vpop.permute.xlu0 %1811  ;;  %v361_v12 = vrot.slane %v2733_v16, %v3002_v10  ;;  %v430_v17 = vrot.slane %v2753_v34, %v2974_v9 }
 0x33c   :  { %v1857_v45 = vmul.f32 %v1816_v57, %v1756_v49  ;;  %v1856_v54 = vmul.f32 %v1812_v56, %v1756_v49  ;;  %v328_v46 = vsel %vm327_vm2, %v326_v35, %v321_v0 }
 0x33e   :  { %1946 = vperm.xlu1 %2605, %v1857_v45   ;;  %1943 = vperm.xlu0 %2604, %v1856_v54   ;;  %v1865_v45 = vmul.f32 %v1784_v63, %v1760_v33  ;;  %v1864_v54 = vmul.f32 %v1780_v47, %v1760_v33  ;;  %v333_v63 = vrot.slane %v2727_v13, %v2978_v8 }
 0x33f   :  { %v1824_v6 = vpop.permute.xlu1 %1823  ;;  %v1820_v59 = vpop.permute.xlu0 %1819  ;;  %v340_v47 = vrot.slane %v2731_v15, %v2985_v2  ;;  %v368_v15 = vrot.slane %v2739_v20, %v3009_v4 }
 0x340   :  { %v1859_v5 = vmul.f32 %v1824_v6, %v1756_v49  ;;  %v1858_v42 = vmul.f32 %v1820_v59, %v1756_v49  ;;  %v1875_v44 = vmul.f32 %v1824_v6, %v1760_v33  ;;  %v1874_v32 = vmul.f32 %v1820_v59, %v1760_v33 }
 0x341   :  { %v335_v62 = vsel %vm334_vm3, %v333_v63, %v328_v46  ;;  %v382_v6 = vrot.slane %v2743_v22, %v3021_v25  ;;  %v439_v59 = vrot.slane %v2757_v36, %v2978_v8  ;;  %v396_v36 = vrot.slane %v2747_v31, %v3033_v1  ;;  %v3704_v31 = vld [vmem:[#allocation17_spill] sm:$0xff] }
 0x342   :  { %1952 = vperm.xlu1 %2605, %v1859_v5   ;;  %1949 = vperm.xlu0 %2604, %v1858_v42   ;;  %v1868_v5 = vmul.f32 %v1796_v48, %v1760_v33  ;;  %v1871_v42 = vmul.f32 %v1808_v24, %v1760_v33  ;;  %v347_v48 = vrot.slane %v2729_v14, %v2990_v28 }
 0x343   :  { %v1828_v7 = vpop.permute.xlu0 %1827  ;;  %v342_v24 = vsel %vm341_vm4, %v340_v47, %v335_v62  ;;  %v375_v14 = vrot.slane %v2737_v19, %v3014_v29  ;;  %v389_v19 = vrot.slane %v2741_v21, %v3026_v51  ;;  %v770_v21 = vrot.slane %v2791_v53, %v2970_v61  ;;  %v3709_v47 = vld [vmem:[#allocation35_spill] sm:$0xff] }
 0x344   :  { %v1860_v52 = vmul.f32 %v1828_v7, %v1756_v49  ;;  %v1870_v49 = vmul.f32 %v1804_v26, %v1760_v33  ;;  %v349_v13 = vsel %vm348_vm5, %v347_v48, %v342_v24  ;;  %v849_v46 = vrot.slane %v3709_v47, %v2970_v61  ;;  %v3710_v24 = vld [vmem:[#allocation20_spill] sm:$0xff] }
 0x345   :  { %v356_v26 = vsel %vm355_vm6, %v354_v11, %v349_v13  ;;  %v785_v11 = vrot.slane %v3710_v24, %v2990_v28 }
 0x346   :  { %1958 = vperm.xlu1 %2605, %v1861_v55   ;;  %1955 = vperm.xlu0 %2604, %v1860_v52   ;;  %v1873_v52 = vmul.f32 %v1816_v57, %v1760_v33  ;;  %v1872_v55 = vmul.f32 %v1812_v56, %v1760_v33  ;;  %v434_v57 = vrot.slane %v2759_v37, %v2970_v61 }
 0x347   :  { %v363_v56 = vsel %vm362_vm7, %v361_v12, %v356_v26  ;;  %v444_v37 = vrot.slane %v2763_v39, %v2985_v2  ;;  %v454_v39 = vrot.slane %v2767_v41, %v2997_v60 }
 0x348   :  { %v370_v16 = vsel %vm369_vm8, %v368_v15, %v363_v56  ;;  %v435_v20 = vsel %vm327_vm2, %v434_v57, %v430_v17  ;;  %v3711_v15 = vld [vmem:[#allocation12_spill] sm:$0xff]  ;;  %v3712_v56 = vld [vmem:[#allocation23_spill] sm:$0xff] }
 0x349   :  { %v440_v22 = vsel %vm334_vm3, %v439_v59, %v435_v20  ;;  %v474_v57 = vrot.slane %v3711_v15, %v3021_v25  ;;  %v790_v17 = vrot.slane %v3712_v56, %v2997_v60  ;;  %v3714_v59 = vld [vmem:[#allocation99_spill] sm:$0xff]  ;;  %v3715_v20 = vld [vmem:[#allocation6_spill] sm:$0xff] }
 0x34a   :  { %1964 = vperm.xlu1 %2605, %v1863_v58   ;;  %1961 = vperm.xlu0 %2604, %v1862_v23   ;;  %v445_v58 = vsel %vm341_vm4, %v444_v37, %v440_v22  ;;  %v417_v37 = vrot.slane %v3715_v20, %v3714_v59 }
 0x34e   :  { %1970 = vperm.xlu1 %2605, %v1865_v45   ;;  %1967 = vperm.xlu0 %2604, %v1864_v54   ;;  %v403_v45 = vrot.slane %v2745_v30, %v3038_v3 }
 0x352   :  { %1976 = vperm.xlu1 %2605, %v1867_v43   ;;  %1973 = vperm.xlu0 %2604, %v1866_v50   ;;  %v2601_v43 = vld [vmem:[%s3591_s2 + $0x5] ss:$0 sm:$0xff]  ;;  %v1876_v50 = vmul.f32 %v1828_v7, %v1760_v33  ;;  %v377_v33 = vsel %vm376_vm9, %v375_v14, %v370_v16  ;;  %v449_v7 = vrot.slane %v2761_v38, %v2990_v28  ;;  %v3713_v16 = vld [vmem:[#allocation32_spill] sm:$0xff] }
 0x353   :  { %v384_v34 = vsel %vm383_vm10, %v382_v6, %v377_v33  ;;  %v459_v38 = vrot.slane %v2765_v40, %v3002_v10  ;;  %v3707_v40 = vld [vmem:[#allocation21_spill] sm:$0xff]  ;;  %v845_v6 = vrot.slane %v3713_v16, %v2974_v9  ;;  %v3717_v33 = vld [vmem:[#allocation7_spill] sm:$0xff] }
 0x354   :  { %v391_v23 = vsel %vm390_vm11, %v389_v19, %v384_v34  ;;  %v450_v54 = vsel %vm348_vm5, %v449_v7, %v445_v58  ;;  %v3716_v19 = vld [vmem:[#allocation98_spill] sm:$0xff] }
 0x355   :  { %v455_v41 = vsel %vm355_vm6, %v454_v39, %v450_v54  ;;  %v410_v34 = vrot.slane %v3717_v33, %v3716_v19  ;;  %v3718_v7 = vld [vmem:[#allocation34_spill] sm:$0xff]  ;;  %v850_v39 = vsel %vm327_vm2, %v849_v46, %v845_v6  ;;  %v3728_v6 = vld [vmem:[#allocation27_spill] sm:$0xff] }
 0x356   :  { %1982 = vperm.xlu1 %2605, %v1869_v18   ;;  %1979 = vperm.xlu0 %2604, %v1868_v5   ;;  %v766_v18 = vrot.slane %v3704_v31, %v2974_v9  ;;  %v398_v5 = vsel %vm397_vm12, %v396_v36, %v391_v23  ;;  %v854_v22 = vrot.slane %v3718_v7, %v2978_v8  ;;  %v3720_v31 = vld [vmem:[#allocation22_spill] sm:$0xff] }
 0x357   :  { %v810_v33 = vrot.slane %v3728_v6, %v3021_v25  ;;  %v3729_v7 = vld [vmem:[#allocation38_spill] sm:$0xff] }
 0x358   :  { %v771_v30 = vsel %vm327_vm2, %v770_v21, %v766_v18  ;;  %v3719_v21 = vld [vmem:[#allocation37_spill] sm:$0xff]  ;;  %v795_v18 = vrot.slane %v3720_v31, %v3002_v10  ;;  %v3740_v6 = vld [vmem:[#allocation18_spill] sm:$0xff] }
 0x359   :  { %v859_v23 = vrot.slane %v3719_v21, %v2985_v2 }
 0x35a   :  { %1988 = vperm.xlu1 %2605, %v1871_v42   ;;  %1985 = vperm.xlu0 %2604, %v1870_v49   ;;  %v3705_v42 = vld [vmem:[#allocation10_spill] sm:$0xff]  ;;  %v3706_v49 = vld [vmem:[#allocation19_spill] sm:$0xff] }
 0x35b   :  { %v464_v53 = vrot.slane %v3705_v42, %v3009_v4 }
 0x35e   :  { %1994 = vperm.xlu1 %2605, %v1873_v52   ;;  %1991 = vperm.xlu0 %2604, %v1872_v55   ;;  %v775_v52 = vrot.slane %v3706_v49, %v2978_v8 }
 0x360   :  { %v776_v63 = vsel %vm334_vm3, %v775_v52, %v771_v30  ;;  %v3722_v30 = vld [vmem:[#allocation25_spill] sm:$0xff] }
 0x362   :  { %2000 = vperm.xlu1 %2605, %v1875_v44   ;;  %1997 = vperm.xlu0 %2604, %v1874_v32   ;;  %v780_v44 = vrot.slane %v3707_v40, %v2985_v2  ;;  %v405_v32 = vsel %vm404_vm13, %v403_v45, %v398_v5  ;;  %v800_v40 = vrot.slane %v3722_v30, %v3009_v4 }
 0x363   :  { %v412_v47 = vsel %vm411_vm14, %v410_v34, %v405_v32  ;;  %v3727_v32 = vld [vmem:[#allocation13_spill] sm:$0xff] }
 0x364   :  { %v781_v14 = vsel %vm341_vm4, %v780_v44, %v776_v63  ;;  %v3723_v44 = vld [vmem:[#allocation14_spill] sm:$0xff]  ;;  %v489_v56 = vrot.slane %v3727_v32, %v3038_v3 }
 0x365   :  { %v786_v5 = vsel %vm348_vm5, %v785_v11, %v781_v14 }
 0x366   :  { %2003 = vperm.xlu0 %2604, %v1876_v50   ;;  %2181 = vbcast.lane.b32.xlu1 %v2601_v43, 256  ;;  %v3708_v50 = vld [vmem:[#allocation9_spill] sm:$0xff] }
 0x367   :  { %v469_v35 = vrot.slane %v3708_v50, %v3014_v29  ;;  %v3724_v50 = vld [vmem:[#allocation36_spill] sm:$0xff] }
 0x36a   :  { %2189 = vbcast.lane.b32.xlu1 %v2601_v43, 272  ;;  %2185 = vbcast.lane.b32.xlu0 %v2601_v43, 264 }
 0x36e   :  { %2197 = vbcast.lane.b32.xlu1 %v2601_v43, 288  ;;  %2193 = vbcast.lane.b32.xlu0 %v2601_v43, 280 }
 0x372   :  { %2205 = vbcast.lane.b32.xlu1 %v2601_v43, 304  ;;  %2201 = vbcast.lane.b32.xlu0 %v2601_v43, 296 }
 0x376   :  { %2213 = vbcast.lane.b32.xlu1 %v2601_v43, 320  ;;  %2209 = vbcast.lane.b32.xlu0 %v2601_v43, 312 }
 0x37a   :  { %2221 = vbcast.lane.b32.xlu1 %v2601_v43, 336  ;;  %2217 = vbcast.lane.b32.xlu0 %v2601_v43, 328 }
 0x37e   :  { %2229 = vbcast.lane.b32.xlu1 %v2601_v43, 352  ;;  %2225 = vbcast.lane.b32.xlu0 %v2601_v43, 344 }
 0x382   :  { %2237 = vbcast.lane.b32.xlu1 %v2601_v43, 368  ;;  %2233 = vbcast.lane.b32.xlu0 %v2601_v43, 360 }
 0x386   :  { %2241 = vbcast.lane.b32.xlu0 %v2601_v43, 376  ;;  %v460_v43 = vsel %vm362_vm7, %v459_v38, %v455_v41 }
 0x387   :  { %v465_v0 = vsel %vm369_vm8, %v464_v53, %v460_v43  ;;  %v3721_v53 = vld [vmem:[#allocation11_spill] sm:$0xff]  ;;  %v484_v43 = vrot.slane %v3723_v44, %v3033_v1 }
 0x388   :  { %v470_v58 = vsel %vm376_vm9, %v469_v35, %v465_v0  ;;  %v479_v49 = vrot.slane %v3721_v53, %v3026_v51  ;;  %v864_v35 = vrot.slane %v3724_v50, %v2990_v28  ;;  %v855_v0 = vsel %vm334_vm3, %v854_v22, %v850_v39  ;;  %v3730_v39 = vld [vmem:[#allocation16_spill] sm:$0xff] }
 0x389   :  { %v475_v52 = vsel %vm383_vm10, %v474_v57, %v470_v58  ;;  %v860_v46 = vsel %vm341_vm4, %v859_v23, %v855_v0  ;;  %v874_v22 = vrot.slane %v3729_v7, %v3002_v10  ;;  %v494_v21 = vrot.slane %v3730_v39, %v3716_v19  ;;  %v3741_v7 = vld [vmem:[#allocation31_spill] sm:$0xff] }
 0x3a5   :  { %v1911_v55 = vpop.permute.xlu1 %1910 }
 0x3a6   :  { %v2008_v12 = vrot.slane %v1911_v55, %v2974_v9  ;;  %v791_v55 = vsel %vm355_vm6, %v790_v17, %v786_v5  ;;  %v480_v17 = vsel %vm390_vm11, %v479_v49, %v475_v52  ;;  %v3732_v5 = vld [vmem:[#allocation26_spill] sm:$0xff]  ;;  %v3733_v52 = vld [vmem:[#allocation100_spill] sm:$0xff] }
 0x3a7   :  { %v796_v15 = vsel %vm362_vm7, %v795_v18, %v791_v55  ;;  %v485_v34 = vsel %vm397_vm12, %v484_v43, %v480_v17  ;;  %v3734_v55 = vld [vmem:[#allocation8_spill] sm:$0xff]  ;;  %v3735_v43 = vld [vmem:[#allocation29_spill] sm:$0xff] }
 0x3a8   :  { %v801_v16 = vsel %vm369_vm8, %v800_v40, %v796_v15  ;;  %v424_v30 = vrot.slane %v3734_v55, %v3733_v52  ;;  %v490_v40 = vsel %vm404_vm13, %v489_v56, %v485_v34  ;;  %v820_v50 = vrot.slane %v3735_v43, %v3033_v1 }
 0x3a9   :  { %v1917_v62 = vpop.permute.xlu1 %1916  ;;  %v1914_v48 = vpop.permute.xlu0 %1913 }
 0x3aa   :  { %v2017_v13 = vrot.slane %v1917_v62, %v2978_v8  ;;  %v2012_v26 = vrot.slane %v1914_v48, %v2970_v61  ;;  %v3725_v62 = vld [vmem:[#allocation39_spill] sm:$0xff] }
 0x3ab   :  { %v869_v48 = vrot.slane %v3725_v62, %v2997_v60 }
 0x3ac   :  { %v2013_v36 = vsel %vm327_vm2, %v2012_v26, %v2008_v12 }
 0x3ad   :  { %v1923_v45 = vpop.permute.xlu1 %1922  ;;  %v2018_v38 = vsel %vm334_vm3, %v2017_v13, %v2013_v36  ;;  %v1920_v54 = vpop.permute.xlu0 %1919  ;;  %v3726_v13 = vld [vmem:[#allocation24_spill] sm:$0xff]  ;;  %v865_v36 = vsel %vm348_vm5, %v864_v35, %v860_v46  ;;  %v3736_v35 = vld [vmem:[#allocation15_spill] sm:$0xff] }
 0x3ae   :  { %v2027_v41 = vrot.slane %v1923_v45, %v2990_v28  ;;  %v2022_v42 = vrot.slane %v1920_v54, %v2985_v2  ;;  %v805_v26 = vrot.slane %v3726_v13, %v3014_v29  ;;  %v870_v23 = vsel %vm355_vm6, %v869_v48, %v865_v36  ;;  %v3731_v45 = vld [vmem:[#allocation41_spill] sm:$0xff] }
 0x3af   :  { %v499_v0 = vrot.slane %v3736_v35, %v3714_v59  ;;  %v875_v62 = vsel %vm362_vm7, %v874_v22, %v870_v23  ;;  %v830_v22 = vrot.slane %v3741_v7, %v3716_v19  ;;  %v419_v36 = vsel %vm418_vm15, %v417_v37, %v412_v47  ;;  %v3743_v37 = vld [vmem:[#allocation68_spill] sm:$0xff] }
 0x3b0   :  { %v2023_v63 = vsel %vm341_vm4, %v2022_v42, %v2018_v38  ;;  %v879_v38 = vrot.slane %v3731_v45, %v3009_v4  ;;  %v806_v42 = vsel %vm376_vm9, %v805_v26, %v801_v16  ;;  %v426_v45 = vsel %vm425_vm0, %v424_v30, %v419_v36 }
 0x3b1   :  { %v1929_v24 = vpop.permute.xlu1 %1928  ;;  %v2028_v11 = vsel %vm348_vm5, %v2027_v41, %v2023_v63  ;;  %v1926_v12 = vpop.permute.xlu0 %1925  ;;  %v815_v41 = vrot.slane %v3732_v5, %v3026_v51  ;;  %v811_v44 = vsel %vm383_vm10, %v810_v33, %v806_v42  ;;  %v3737_v63 = vld [vmem:[#allocation40_spill] sm:$0xff]  ;;  %v504_v33 = vrot.slane %v3740_v6, %v3733_v52 }
 0x3b2   :  { %v2037_v57 = vrot.slane %v1929_v24, %v3002_v10  ;;  %v2032_v14 = vrot.slane %v1926_v12, %v2997_v60  ;;  %v884_v46 = vrot.slane %v3737_v63, %v3014_v29  ;;  %v495_v24 = vsel %vm411_vm14, %v494_v21, %v490_v40  ;;  %v3738_v12 = vld [vmem:[#allocation43_spill] sm:$0xff]  ;;  %v3745_v40 = vld [vmem:[#allocation45_spill] sm:$0xff] }
 0x3b3   :  { %v889_v13 = vrot.slane %v3738_v12, %v3021_v25  ;;  %v816_v56 = vsel %vm390_vm11, %v815_v41, %v811_v44  ;;  %v1263_v47 = vrot.slane %v3743_v37, %v2970_v61  ;;  %v899_v44 = vrot.slane %v3745_v40, %v3033_v1  ;;  %v3750_v12 = vld [vmem:[#allocation67_spill] sm:$0xff]  ;;  %v3756_v37 = vld [vmem:[#allocation46_spill] sm:$0xff]  ;;  %v3758_v40 = vld [vmem:[#allocation72_spill] sm:$0xff] }
 0x3b4   :  { %v2033_v58 = vsel %vm355_vm6, %v2032_v14, %v2028_v11  ;;  %v880_v11 = vsel %vm369_vm8, %v879_v38, %v875_v62  ;;  %v3739_v14 = vld [vmem:[#allocation28_spill] sm:$0xff]  ;;  %v821_v34 = vsel %vm397_vm12, %v820_v50, %v816_v56  ;;  %v500_v38 = vsel %vm418_vm15, %v499_v0, %v495_v24  ;;  %v3747_v0 = vld [vmem:[#allocation65_spill] sm:$0xff]  ;;  %v3749_v24 = vld [vmem:[#allocation50_spill] sm:$0xff] }
 0x3b5   :  { %v1935_v54 = vpop.permute.xlu1 %1934  ;;  %v2038_v31 = vsel %vm362_vm7, %v2037_v57, %v2033_v58  ;;  %v1932_v18 = vpop.permute.xlu0 %1931  ;;  %v825_v32 = vrot.slane %v3739_v14, %v3038_v3  ;;  %v3742_v58 = vld [vmem:[#allocation42_spill] sm:$0xff]  ;;  %v885_v21 = vsel %vm376_vm9, %v884_v46, %v880_v11  ;;  %v3746_v50 = vld [vmem:[#allocation52_spill] sm:$0xff]  ;;  %v1259_v63 = vrot.slane %v3747_v0, %v2974_v9 }
 0x3b6   :  { %v2047_v53 = vrot.slane %v1935_v54, %v3014_v29  ;;  %v2042_v49 = vrot.slane %v1932_v18, %v3009_v4  ;;  %v894_v39 = vrot.slane %v3742_v58, %v3026_v51  ;;  %v890_v54 = vsel %vm383_vm10, %v889_v13, %v885_v21  ;;  %v3748_v62 = vld [vmem:[#allocation44_spill] sm:$0xff]  ;;  %v3753_v58 = vld [vmem:[#allocation54_spill] sm:$0xff] }
 0x3b7   :  { %v826_v20 = vsel %vm404_vm13, %v825_v32, %v821_v34  ;;  %v1184_v35 = vrot.slane %v3746_v50, %v2970_v61  ;;  %v1180_v11 = vrot.slane %v3749_v24, %v2974_v9  ;;  %v1268_v13 = vrot.slane %v3750_v12, %v2978_v8  ;;  %v3751_v32 = vld [vmem:[#allocation70_spill] sm:$0xff]  ;;  %v3752_v34 = vld [vmem:[#allocation51_spill] sm:$0xff]  ;;  %v3760_v0 = vld [vmem:[#allocation56_spill] sm:$0xff] }
 0x3b8   :  { %v2043_v48 = vsel %vm369_vm8, %v2042_v49, %v2038_v31  ;;  %v3744_v49 = vld [vmem:[#allocation30_spill] sm:$0xff]  ;;  %v831_v30 = vsel %vm411_vm14, %v830_v22, %v826_v20  ;;  %v895_v43 = vsel %vm390_vm11, %v894_v39, %v890_v54  ;;  %v1264_v14 = vsel %vm327_vm2, %v1263_v47, %v1259_v63  ;;  %v3755_v54 = vld [vmem:[#allocation84_spill] sm:$0xff]  ;;  %v3762_v24 = vld [vmem:[#allocation47_spill] sm:$0xff] }
 0x3b9   :  { %v1941_v26 = vpop.permute.xlu1 %1940  ;;  %v2048_v15 = vsel %vm376_vm9, %v2047_v53, %v2043_v48  ;;  %v1938_v57 = vpop.permute.xlu0 %1937  ;;  %v505_v53 = vsel %vm425_vm0, %v504_v33, %v500_v38  ;;  %v835_v55 = vrot.slane %v3744_v49, %v3714_v59  ;;  %v904_v48 = vrot.slane %v3748_v62, %v3038_v3  ;;  %v3757_v49 = vld [vmem:[#allocation53_spill] sm:$0xff] }
 0x3ba   :  { %v2057_v17 = vrot.slane %v1941_v26, %v3026_v51  ;;  %v2052_v16 = vrot.slane %v1938_v57, %v3021_v25  ;;  %v1273_v56 = vrot.slane %v3751_v32, %v2985_v2  ;;  %v3288_v6 = vsel %vm506_vm1, %v505_v53, %v426_v45  ;;  %v3764_v32 = vld [vmem:[#allocation71_spill] sm:$0xff] }
 0x3bb   :  { %v900_v33 = vsel %vm397_vm12, %v899_v44, %v895_v43  ;;  %v1189_v7 = vrot.slane %v3752_v34, %v2978_v8  ;;  %v3294_v22 = vsel %vm418_vm15, %v835_v55, %v831_v30  ;;  %v1185_v36 = vsel %vm327_vm2, %v1184_v35, %v1180_v11  ;;  %v3759_v43 = vld [vmem:[#allocation82_spill] sm:$0xff]  ;;  %v3765_v34 = vld [vmem:[#allocation55_spill] sm:$0xff] }
 0x3bc   :  { %v2053_v23 = vsel %vm383_vm10, %v2052_v16, %v2048_v15  ;;  %v1194_v39 = vrot.slane %v3753_v58, %v2985_v2  ;;  %v1269_v45 = vsel %vm334_vm3, %v1268_v13, %v1264_v14  ;;  %v914_v47 = vrot.slane %v3756_v37, %v3714_v59 }
 0x3bd   :  { %v1947_v31 = vpop.permute.xlu1 %1946  ;;  %v2058_v18 = vsel %vm390_vm11, %v2057_v17, %v2053_v23  ;;  %v1944_v5 = vpop.permute.xlu0 %1943  ;;  %v3754_v23 = vld [vmem:[#allocation69_spill] sm:$0xff]  ;;  %v1199_v55 = vrot.slane %v3757_v49, %v2990_v28  ;;  %v1190_v30 = vsel %vm334_vm3, %v1189_v7, %v1185_v36  ;;  %v1283_v44 = vrot.slane %v3758_v40, %v2997_v60 }
 0x3be   :  { %v2067_v41 = vrot.slane %v1947_v31, %v3038_v3  ;;  %v2062_v42 = vrot.slane %v1944_v5, %v3033_v1  ;;  %v1278_v38 = vrot.slane %v3754_v23, %v2990_v28  ;;  %v1598_v31 = vrot.slane %v3755_v54, %v2970_v61  ;;  %v3770_v40 = vld [vmem:[#allocation73_spill] sm:$0xff] }
 0x3bf   :  { %v1594_v50 = vrot.slane %v3759_v43, %v2974_v9  ;;  %v1195_v35 = vsel %vm341_vm4, %v1194_v39, %v1190_v30  ;;  %v1204_v63 = vrot.slane %v3760_v0, %v2997_v60  ;;  %v909_v11 = vrot.slane %v3762_v24, %v3716_v19  ;;  %v3766_v39 = vld [vmem:[#allocation74_spill] sm:$0xff] }
 0x3c0   :  { %v2063_v46 = vsel %vm397_vm12, %v2062_v42, %v2058_v18  ;;  %v1274_v42 = vsel %vm341_vm4, %v1273_v56, %v1269_v45  ;;  %v1288_v56 = vrot.slane %v3764_v32, %v3002_v10  ;;  %v1209_v7 = vrot.slane %v3765_v34, %v3002_v10  ;;  %v3775_v34 = vld [vmem:[#allocation75_spill] sm:$0xff] }
 0x3c1   :  { %v1953_v26 = vpop.permute.xlu1 %1952  ;;  %v2068_v15 = vsel %vm404_vm13, %v2067_v41, %v2063_v46  ;;  %v1950_v57 = vpop.permute.xlu0 %1949  ;;  %v905_v41 = vsel %vm404_vm13, %v904_v48, %v900_v33  ;;  %v3761_v46 = vld [vmem:[#allocation83_spill] sm:$0xff]  ;;  %v1279_v12 = vsel %vm348_vm5, %v1278_v38, %v1274_v42  ;;  %v1599_v13 = vsel %vm327_vm2, %v1598_v31, %v1594_v50  ;;  %v3767_v38 = vld [vmem:[#allocation85_spill] sm:$0xff]  ;;  %v3769_v42 = vld [vmem:[#allocation88_spill] sm:$0xff] }
 0x3c2   :  { %v2077_v17 = vrot.slane %v1953_v26, %v3714_v59  ;;  %v2072_v16 = vrot.slane %v1950_v57, %v3716_v19  ;;  %v1603_v62 = vrot.slane %v3761_v46, %v2978_v8  ;;  %v3763_v26 = vld [vmem:[#allocation86_spill] sm:$0xff]  ;;  %v1200_v36 = vsel %vm348_vm5, %v1199_v55, %v1195_v35 }
 0x3c3   :  { %v1284_v58 = vsel %vm355_vm6, %v1283_v44, %v1279_v12  ;;  %v1205_v23 = vsel %vm355_vm6, %v1204_v63, %v1200_v36  ;;  %v1613_v45 = vrot.slane %v3767_v38, %v2990_v28  ;;  %v1298_v44 = vrot.slane %v3770_v40, %v3014_v29  ;;  %v3772_v12 = vld [vmem:[#allocation57_spill] sm:$0xff]  ;;  %v3777_v38 = vld [vmem:[#allocation60_spill] sm:$0xff] }
 0x3c4   :  { %v2073_v21 = vsel %vm411_vm14, %v2072_v16, %v2068_v15  ;;  %v1608_v15 = vrot.slane %v3763_v26, %v2985_v2  ;;  %v1604_v54 = vsel %vm334_vm3, %v1603_v62, %v1599_v13  ;;  %v1289_v43 = vsel %vm362_vm7, %v1288_v56, %v1284_v58  ;;  %v3771_v62 = vld [vmem:[#allocation76_spill] sm:$0xff]  ;;  %v3773_v26 = vld [vmem:[#allocation87_spill] sm:$0xff] }
 0x3c5   :  { %v1959_v18 = vpop.permute.xlu1 %1958  ;;  %v2078_v5 = vsel %vm418_vm15, %v2077_v17, %v2073_v21  ;;  %v1956_v20 = vpop.permute.xlu0 %1955  ;;  %v1293_v21 = vrot.slane %v3766_v39, %v3009_v4  ;;  %v910_v0 = vsel %vm411_vm14, %v909_v11, %v905_v41  ;;  %v1210_v63 = vsel %vm362_vm7, %v1209_v7, %v1205_v23  ;;  %v3774_v11 = vld [vmem:[#allocation90_spill] sm:$0xff]  ;;  %v3780_v40 = vld [vmem:[#allocation92_spill] sm:$0xff] }
 0x3c6   :  { %v2082_v53 = vrot.slane %v1956_v20, %v3733_v52  ;;  %v2087_v17 = vrot.slane %v1959_v18, %v2974_v9  ;;  %v3768_v18 = vld [vmem:[#allocation58_spill] sm:$0xff]  ;;  %v1609_v20 = vsel %vm341_vm4, %v1608_v15, %v1604_v54  ;;  %v1303_v24 = vrot.slane %v3771_v62, %v3021_v25 }
 0x3c7   :  { %v1294_v46 = vsel %vm369_vm8, %v1293_v21, %v1289_v43  ;;  %v1219_v13 = vrot.slane %v3772_v12, %v3014_v29  ;;  %v1623_v15 = vrot.slane %v3773_v26, %v3002_v10  ;;  %v1628_v56 = vrot.slane %v3774_v11, %v3009_v4  ;;  %v3776_v21 = vld [vmem:[#allocation33_spill] sm:$0xff] }
 0x3c8   :  { %v3324_v48 = vsel %vm425_vm0, %v2082_v53, %v2078_v5  ;;  %v1214_v5 = vrot.slane %v3768_v18, %v3009_v4  ;;  %v1618_v53 = vrot.slane %v3769_v42, %v2997_v60  ;;  %v1308_v7 = vrot.slane %v3775_v34, %v3026_v51  ;;  %v3787_v34 = vld [vmem:[#allocation94_spill] sm:$0xff] }
 0x3c9   :  { %v1965_v57 = vpop.permute.xlu1 %1964  ;;  %v1962_v14 = vpop.permute.xlu0 %1961  ;;  %v1299_v36 = vsel %vm376_vm9, %v1298_v44, %v1294_v46  ;;  %v840_v23 = vrot.slane %v3776_v21, %v3733_v52  ;;  %v1638_v44 = vrot.slane %v3780_v40, %v3021_v25  ;;  %v3788_v21 = vld [vmem:[#allocation61_spill] sm:$0xff] }
 0x3ca   :  { %v2096_v16 = vrot.slane %v1965_v57, %v2978_v8  ;;  %v2091_v33 = vrot.slane %v1962_v14, %v2970_v61  ;;  %v1614_v57 = vsel %vm348_vm5, %v1613_v45, %v1609_v20  ;;  %v1215_v32 = vsel %vm369_vm8, %v1214_v5, %v1210_v63  ;;  %v3779_v20 = vld [vmem:[#allocation89_spill] sm:$0xff] }
 0x3cb   :  { %v1619_v41 = vsel %vm355_vm6, %v1618_v53, %v1614_v57  ;;  %v1224_v45 = vrot.slane %v3777_v38, %v3021_v25  ;;  %v1304_v54 = vsel %vm383_vm10, %v1303_v24, %v1299_v36  ;;  %v915_v5 = vsel %vm418_vm15, %v914_v47, %v910_v0  ;;  %v3781_v47 = vld [vmem:[#allocation59_spill] sm:$0xff]  ;;  %v3782_v24 = vld [vmem:[#allocation62_spill] sm:$0xff]  ;;  %v3784_v57 = vld [vmem:[#allocation80_spill] sm:$0xff] }
 0x3cc   :  { %v2092_v31 = vsel %vm327_vm2, %v2091_v33, %v2087_v17  ;;  %v1633_v42 = vrot.slane %v3779_v20, %v3014_v29  ;;  %v1624_v53 = vsel %vm362_vm7, %v1623_v15, %v1619_v41  ;;  %v1309_v0 = vsel %vm390_vm11, %v1308_v7, %v1304_v54  ;;  %v3789_v20 = vld [vmem:[#allocation64_spill] sm:$0xff]  ;;  %v3791_v40 = vld [vmem:[#allocation93_spill] sm:$0xff] }
 0x3cd   :  { %v1971_v49 = vpop.permute.xlu1 %1970  ;;  %v2097_v55 = vsel %vm334_vm3, %v2096_v16, %v2092_v31  ;;  %v1968_v30 = vpop.permute.xlu0 %1967  ;;  %v3778_v31 = vld [vmem:[#allocation78_spill] sm:$0xff]  ;;  %v1234_v12 = vrot.slane %v3782_v24, %v3033_v1  ;;  %v1648_v7 = vrot.slane %v3787_v34, %v3033_v1  ;;  %v1239_v38 = vrot.slane %v3788_v21, %v3038_v3  ;;  %v3796_v34 = vld [vmem:[#allocation95_spill] sm:$0xff] }
 0x3ce   :  { %v2106_v50 = vrot.slane %v1971_v49, %v2990_v28  ;;  %v2101_v35 = vrot.slane %v1968_v30, %v2985_v2  ;;  %v1313_v18 = vrot.slane %v3778_v31, %v3033_v1  ;;  %v1629_v30 = vsel %vm369_vm8, %v1628_v56, %v1624_v53  ;;  %v3790_v53 = vld [vmem:[#allocation79_spill] sm:$0xff] }
 0x3cf   :  { %v1634_v11 = vsel %vm376_vm9, %v1633_v42, %v1629_v30  ;;  %v1244_v42 = vrot.slane %v3789_v20, %v3716_v19 }
 0x3d0   :  { %v2102_v14 = vsel %vm341_vm4, %v2101_v35, %v2097_v55  ;;  %v1220_v55 = vsel %vm376_vm9, %v1219_v13, %v1215_v32  ;;  %v1229_v35 = vrot.slane %v3781_v47, %v3026_v51  ;;  %v3783_v13 = vld [vmem:[#allocation77_spill] sm:$0xff]  ;;  %v1314_v15 = vsel %vm397_vm12, %v1313_v18, %v1309_v0  ;;  %v3785_v32 = vld [vmem:[#allocation91_spill] sm:$0xff]  ;;  %v3793_v0 = vld [vmem:[#allocation96_spill] sm:$0xff] }
 0x3d1   :  { %v1977_v17 = vpop.permute.xlu1 %1976  ;;  %v2107_v16 = vsel %vm348_vm5, %v2106_v50, %v2102_v14  ;;  %v1974_v33 = vpop.permute.xlu0 %1973  ;;  %v1225_v62 = vsel %vm383_vm10, %v1224_v45, %v1220_v55  ;;  %v1318_v26 = vrot.slane %v3783_v13, %v3038_v3  ;;  %v1323_v14 = vrot.slane %v3784_v57, %v3716_v19 }
 0x3d2   :  { %v2116_v58 = vrot.slane %v1977_v17, %v3002_v10  ;;  %v2111_v39 = vrot.slane %v1974_v33, %v2997_v60  ;;  %v1643_v41 = vrot.slane %v3785_v32, %v3026_v51  ;;  %v3786_v17 = vld [vmem:[#allocation49_spill] sm:$0xff]  ;;  %v1639_v33 = vsel %vm383_vm10, %v1638_v44, %v1634_v11  ;;  %v3795_v11 = vld [vmem:[#allocation66_spill] sm:$0xff] }
 0x3d3   :  { %v1230_v45 = vsel %vm390_vm11, %v1229_v35, %v1225_v62  ;;  %v1319_v55 = vsel %vm404_vm13, %v1318_v26, %v1314_v15  ;;  %v1653_v44 = vrot.slane %v3791_v40, %v3038_v3 }
 0x3d4   :  { %v2112_v49 = vsel %vm355_vm6, %v2111_v39, %v2107_v16  ;;  %v919_v16 = vrot.slane %v3786_v17, %v3733_v52  ;;  %v1235_v18 = vsel %vm397_vm12, %v1234_v12, %v1230_v45  ;;  %v1324_v30 = vsel %vm411_vm14, %v1323_v14, %v1319_v55  ;;  %v3794_v12 = vld [vmem:[#allocation63_spill] sm:$0xff]  ;;  %v2596_v17 = vld [vmem:[%s3592_s3] ss:$0 sm:$0xff]  ;;  %s2635_s3 = smov [#allocation2]  }
 0x3d5   :  { %v1983_v43 = vpop.permute.xlu1 %1982  ;;  %v2117_v50 = vsel %vm362_vm7, %v2116_v58, %v2112_v49  ;;  %v1980_v37 = vpop.permute.xlu0 %1979  ;;  %v1328_v49 = vrot.slane %v3790_v53, %v3714_v59  ;;  %v1249_v13 = vrot.slane %v3794_v12, %v3714_v59  ;;  %v1240_v26 = vsel %vm404_vm13, %v1239_v38, %v1235_v18  ;;  %v3798_v53 = vld [vmem:[#allocation48_spill] sm:$0xff]  ;;  %s2587_s8 = sshll.u32 %s2635_s3, 4  ;;  %s2588_s8 = int_to_ptr.vmem [resolvable:$true] %s2587_s8 }
 0x3d6   :  { %v2126_v63 = vrot.slane %v1983_v43, %v3014_v29  ;;  %v2121_v46 = vrot.slane %v1980_v37, %v3009_v4  ;;  %v1644_v43 = vsel %vm390_vm11, %v1643_v41, %v1639_v33  ;;  %v3792_v37 = vld [vmem:[#allocation81_spill] sm:$0xff]  ;;  %v841_v14 = vsel %vm425_vm0, %v840_v23, %v3294_v22  ;;  %s2610_s9 = scalar_lea.vmem %s2588_s8, 32  ;;  %p2615_p1 = scmp.lt.s32.totalorder %s2588_s8, %s2588_s8 }
 0x3d7   :  { %v1333_v47 = vrot.slane %v3792_v37, %v3733_v52  ;;  %v1649_v35 = vsel %vm397_vm12, %v1648_v7, %v1644_v43  ;;  %v920_v32 = vsel %vm425_vm0, %v919_v16, %v915_v5  ;;  %v1245_v41 = vsel %vm411_vm14, %v1244_v42, %v1240_v26  ;;  %v3797_v16 = vld [vmem:[#allocation97_spill] sm:$0xff]  ;;  %p2611_p0 = scmp.ne.s32.totalorder %s2588_s8, %s2610_s9  ;;  %p2616_p2 = scmp.lt.s32.totalorder %s2610_s9, %s2610_s9 }
 0x3d8   :  { %v2122_v56 = vsel %vm369_vm8, %v2121_v46, %v2117_v50  ;;  %v1329_v33 = vsel %vm418_vm15, %v1328_v49, %v1324_v30  ;;  %v1663_v7 = vrot.slane %v3796_v34, %v3714_v59  ;;  %v921_v45 = vsel %vm506_vm1, %v920_v32, %v841_v14  ;;  %v3799_v49 = vld [vmem:[#allocation5_spill] sm:$0xff] }
 0x3d9   :  { %v1989_v36 = vpop.permute.xlu1 %1988  ;;  %v2127_v58 = vsel %vm376_vm9, %v2126_v63, %v2122_v56  ;;  %v1986_v39 = vpop.permute.xlu0 %1985  ;;  %v1658_v63 = vrot.slane %v3793_v0, %v3716_v19  ;;  %v1254_v56 = vrot.slane %v3795_v11, %v3733_v52  ;;  %v1334_v23 = vsel %vm425_vm0, %v1333_v47, %v1329_v33  ;;  %p2617_p3 = por %p2616_p2, %p2615_p1 }
 0x3da   :  { %v2136_v54 = vrot.slane %v1989_v36, %v3026_v51  ;;  %v2131_v31 = vrot.slane %v1986_v39, %v3021_v25  ;;  %v1654_v36 = vsel %vm404_vm13, %v1653_v44, %v1649_v35  ;;  %v509_v20 = vadd.f32 %v2596_v17, %v3288_v6 }
 0x3db   :  { %v1659_v5 = vsel %vm411_vm14, %v1658_v63, %v1654_v36  ;;  %v3477_v55 = vrot.slane %v3799_v49, %v3798_v53  ;;  %v3800_v63 = vld [vmem:[#allocation101_spill] sm:$0xff]  ;;  %p2618_p4 = pnand %p2617_p3, %p2611_p0 }
 0x3dc   :  { %v2132_v50 = vsel %vm383_vm10, %v2131_v31, %v2127_v58  ;;  %v1668_v58 = vrot.slane %v3797_v16, %v3733_v52  ;;  %v1664_v40 = vsel %vm418_vm15, %v1663_v7, %v1659_v5  ;;  %v923_v43 = vadd.f32 %v921_v45, %v509_v20 }
 0x3dd   :  { %v1995_v46 = vpop.permute.xlu1 %1994  ;;  %v2137_v62 = vsel %vm390_vm11, %v2136_v54, %v2132_v50  ;;  %v1992_v24 = vpop.permute.xlu0 %1991  ;;  %v1250_v54 = vsel %vm418_vm15, %v1249_v13, %v1245_v41 }
 0x3de   :  { %v2146_v15 = vrot.slane %v1995_v46, %v3038_v3  ;;  %v2141_v57 = vrot.slane %v1992_v24, %v3033_v1  ;;  %v1255_v42 = vsel %vm425_vm0, %v1254_v56, %v1250_v54  ;;  %v1669_v50 = vsel %vm425_vm0, %v1668_v58, %v1664_v40 }
 0x3df   :  { %v1335_v30 = vsel %vm506_vm1, %v1334_v23, %v1255_v42  ;;  %v1749_v46 = vsel %vm506_vm1, %v3800_v63, %v1669_v50 }
 0x3e0   :  { %v2142_v22 = vsel %vm397_vm12, %v2141_v57, %v2137_v62  ;;  %v1337_v62 = vadd.f32 %v1335_v30, %v923_v43 }
 0x3e1   :  { %v2001_v39 = vpop.permute.xlu1 %2000  ;;  %v2147_v21 = vsel %vm404_vm13, %v2146_v15, %v2142_v22  ;;  %v1998_v38 = vpop.permute.xlu0 %1997 }
 0x3e2   :  { %v2156_v31 = vrot.slane %v2001_v39, %v3714_v59  ;;  %v2151_v18 = vrot.slane %v1998_v38, %v3716_v19  ;;  %v1751_v26 = vadd.f32 %v1749_v46, %v1337_v62  ;;  %v2174_v38 = vrot.slane %v2690_v27, %v3798_v53 }
 0x3e4   :  { %v2152_v44 = vsel %vm411_vm14, %v2151_v18, %v2147_v21 }
 0x3e5   :  { %v2182_v37 = vpop.permute.xlu1 %2181  ;;  %v2157_v47 = vsel %vm418_vm15, %v2156_v31, %v2152_v44  ;;  %v2004_v35 = vpop.permute.xlu0 %2003 }
 0x3e6   :  { %v2259_v6 = vmul.f32 %v2182_v37, %v3477_v55  ;;  %v2161_v0 = vrot.slane %v2004_v35, %v3733_v52  ;;  %v2275_v45 = vmul.f32 %v2182_v37, %v2174_v38 }
 0x3e8   :  { %v2162_v24 = vsel %vm425_vm0, %v2161_v0, %v2157_v47  ;;  %2324 = vperm.xlu1 %2605, %v2259_v6  }
 0x3e9   :  { %v2190_v12 = vpop.permute.xlu1 %2189  ;;  %v2186_v13 = vpop.permute.xlu0 %2185  ;;  %v2163_v15 = vsel %vm506_vm1, %v2162_v24, %v3324_v48 }
 0x3ea   :  { %v2261_v57 = vmul.f32 %v2190_v12, %v3477_v55  ;;  %v2260_v14 = vmul.f32 %v2186_v13, %v3477_v55  ;;  %v3493_v32 = vadd.f32 %v2163_v15, %v1751_v26  ;;  %v2276_v54 = vmul.f32 %v2186_v13, %v2174_v38 }
 0x3eb   :  { %v2277_v31 = vmul.f32 %v2190_v12, %v2174_v38 }
 0x3ec   :  { %2330 = vperm.xlu1 %2605, %v2261_v57   ;;  %2327 = vperm.xlu0 %2604, %v2260_v14  }
 0x3ed   :  { %v2198_v41 = vpop.permute.xlu1 %2197  ;;  %v2194_v11 = vpop.permute.xlu0 %2193 }
 0x3ee   :  { %v2263_v56 = vmul.f32 %v2198_v41, %v3477_v55  ;;  %v2262_v17 = vmul.f32 %v2194_v11, %v3477_v55  ;;  %v2278_v18 = vmul.f32 %v2194_v11, %v2174_v38  ;;  %v2279_v20 = vmul.f32 %v2198_v41, %v2174_v38 }
 0x3f0   :  { %2336 = vperm.xlu1 %2605, %v2263_v56   ;;  %2333 = vperm.xlu0 %2604, %v2262_v17  }
 0x3f1   :  { %v2206_v33 = vpop.permute.xlu1 %2205  ;;  %v2202_v34 = vpop.permute.xlu0 %2201 }
 0x3f2   :  { %v2265_v48 = vmul.f32 %v2206_v33, %v3477_v55  ;;  %v2264_v7 = vmul.f32 %v2202_v34, %v3477_v55  ;;  %v2280_v42 = vmul.f32 %v2202_v34, %v2174_v38  ;;  %v2281_v49 = vmul.f32 %v2206_v33, %v2174_v38 }
 0x3f4   :  { %2342 = vperm.xlu1 %2605, %v2265_v48   ;;  %2339 = vperm.xlu0 %2604, %v2264_v7  }
 0x3f5   :  { %v2214_v36 = vpop.permute.xlu1 %2213  ;;  %v2210_v22 = vpop.permute.xlu0 %2209 }
 0x3f6   :  { %v2267_v23 = vmul.f32 %v2214_v36, %v3477_v55  ;;  %v2266_v5 = vmul.f32 %v2210_v22, %v3477_v55  ;;  %v2282_v30 = vmul.f32 %v2210_v22, %v2174_v38  ;;  %v2283_v40 = vmul.f32 %v2214_v36, %v2174_v38 }
 0x3f8   :  { %2348 = vperm.xlu1 %2605, %v2267_v23   ;;  %2345 = vperm.xlu0 %2604, %v2266_v5  }
 0x3f9   :  { %v2222_v16 = vpop.permute.xlu1 %2221  ;;  %v2218_v58 = vpop.permute.xlu0 %2217 }
 0x3fa   :  { %v2269_v39 = vmul.f32 %v2222_v16, %v3477_v55  ;;  %v2268_v21 = vmul.f32 %v2218_v58, %v3477_v55  ;;  %v2284_v27 = vmul.f32 %v2218_v58, %v2174_v38  ;;  %v2285_v44 = vmul.f32 %v2222_v16, %v2174_v38 }
 0x3fc   :  { %2354 = vperm.xlu1 %2605, %v2269_v39   ;;  %2351 = vperm.xlu0 %2604, %v2268_v21  }
 0x3fd   :  { %v2226_v53 = vpop.permute.xlu0 %2225  ;;  %v2230_v50 = vpop.permute.xlu1 %2229 }
 0x3fe   :  { %v2270_v43 = vmul.f32 %v2226_v53, %v3477_v55  ;;  %v2271_v37 = vmul.f32 %v2230_v50, %v3477_v55  ;;  %v2286_v47 = vmul.f32 %v2226_v53, %v2174_v38  ;;  %v2287_v6 = vmul.f32 %v2230_v50, %v2174_v38 }
 0x400   :  { %2375 = vperm.xlu1 %2605, %v2276_v54   ;;  %2372 = vperm.xlu0 %2604, %v2275_v45  }
 0x401   :  { %v2234_v35 = vpop.permute.xlu0 %2233  ;;  %v2238_v63 = vpop.permute.xlu1 %2237 }
 0x402   :  { %v2272_v0 = vmul.f32 %v2234_v35, %v3477_v55  ;;  %v2273_v46 = vmul.f32 %v2238_v63, %v3477_v55  ;;  %v2288_v62 = vmul.f32 %v2234_v35, %v2174_v38  ;;  %v2289_v12 = vmul.f32 %v2238_v63, %v2174_v38 }
 0x404   :  { %2381 = vperm.xlu1 %2605, %v2278_v18   ;;  %2378 = vperm.xlu0 %2604, %v2277_v31  }
 0x405   :  { %v2242_v24 = vpop.permute.xlu0 %2241 }
 0x406   :  { %v2274_v13 = vmul.f32 %v2242_v24, %v3477_v55  ;;  %v2290_v26 = vmul.f32 %v2242_v24, %v2174_v38 }
 0x408   :  { %2387 = vperm.xlu1 %2605, %v2280_v42   ;;  %2384 = vperm.xlu0 %2604, %v2279_v20  }
 0x40c   :  { %2393 = vperm.xlu1 %2605, %v2282_v30   ;;  %2390 = vperm.xlu0 %2604, %v2281_v49  }
 0x410   :  { %2399 = vperm.xlu1 %2605, %v2284_v27   ;;  %2396 = vperm.xlu0 %2604, %v2283_v40  }
 0x414   :  { %2402 = vperm.xlu0 %2604, %v2285_v44   ;;  %2357 = vperm.xlu1 %2605, %v2270_v43  }
 0x418   :  { %2405 = vperm.xlu0 %2604, %v2286_v47   ;;  %2360 = vperm.xlu1 %2605, %v2271_v37  }
 0x41c   :  { %2408 = vperm.xlu0 %2604, %v2287_v6   ;;  %2363 = vperm.xlu1 %2605, %v2272_v0  }
 0x420   :  { %2411 = vperm.xlu0 %2604, %v2288_v62   ;;  %2366 = vperm.xlu1 %2605, %v2273_v46  }
 0x424   :  { %2414 = vperm.xlu0 %2604, %v2289_v12   ;;  %2369 = vperm.xlu1 %2605, %v2274_v13  }
 0x428   :  { %2417 = vperm.xlu0 %2604, %v2290_v26  }
 0x467   :  { %v2325_v15 = vpop.permute.xlu1 %2324 }
 0x468   :  { %v2422_v54 = vrot.slane %v2325_v15, %v2974_v9 }
 0x46b   :  { %v2331_v57 = vpop.permute.xlu1 %2330  ;;  %v2328_v14 = vpop.permute.xlu0 %2327 }
 0x46c   :  { %v2426_v21 = vrot.slane %v2328_v14, %v2970_v61  ;;  %v2431_v20 = vrot.slane %v2331_v57, %v2978_v8 }
 0x46e   :  { %v2427_v49 = vsel %vm327_vm2, %v2426_v21, %v2422_v54 }
 0x46f   :  { %v2337_v41 = vpop.permute.xlu1 %2336  ;;  %v2334_v11 = vpop.permute.xlu0 %2333 }
 0x470   :  { %v2436_v30 = vrot.slane %v2334_v11, %v2985_v2  ;;  %v2441_v43 = vrot.slane %v2337_v41, %v2990_v28 }
 0x473   :  { %v2343_v56 = vpop.permute.xlu1 %2342  ;;  %v2340_v17 = vpop.permute.xlu0 %2339 }
 0x474   :  { %v2446_v37 = vrot.slane %v2340_v17, %v2997_v60 }
 0x477   :  { %v2349_v33 = vpop.permute.xlu1 %2348  ;;  %v2346_v34 = vpop.permute.xlu0 %2345 }
 0x478   :  { %v2456_v24 = vrot.slane %v2346_v34, %v3009_v4  ;;  %v2461_v15 = vrot.slane %v2349_v33, %v3014_v29 }
 0x47b   :  { %v3510_v48 = vpop.permute.xlu1 %2354  ;;  %v2352_v7 = vpop.permute.xlu0 %2351 }
 0x47c   :  { %v2466_v11 = vrot.slane %v2352_v7, %v3021_v25 }
 0x47f   :  { %v2376_v36 = vpop.permute.xlu1 %2375  ;;  %v2373_v22 = vpop.permute.xlu0 %2372 }
 0x480   :  { %v2505_v31 = vrot.slane %v2376_v36, %v2970_v61  ;;  %v2501_v18 = vrot.slane %v2373_v22, %v2974_v9  ;;  %v2432_v61 = vsel %vm334_vm3, %v2431_v20, %v2427_v49  ;;  %v2471_v36 = vrot.slane %v3510_v48, %v3026_v51 }
 0x482   :  { %v2506_v53 = vsel %vm327_vm2, %v2505_v31, %v2501_v18 }
 0x483   :  { %v2382_v23 = vpop.permute.xlu1 %2381  ;;  %v2379_v55 = vpop.permute.xlu0 %2378 }
 0x484   :  { %v2510_v42 = vrot.slane %v2379_v55, %v2978_v8  ;;  %v2515_v44 = vrot.slane %v2382_v23, %v2985_v2  ;;  %v2437_v8 = vsel %vm341_vm4, %v2436_v30, %v2432_v61  ;;  %v2451_v2 = vrot.slane %v2343_v56, %v3002_v10 }
 0x485   :  { %v2442_v63 = vsel %vm348_vm5, %v2441_v43, %v2437_v8 }
 0x486   :  { %v2511_v9 = vsel %vm334_vm3, %v2510_v42, %v2506_v53 }
 0x487   :  { %v2388_v5 = vpop.permute.xlu1 %2387  ;;  %v2385_v16 = vpop.permute.xlu0 %2384  ;;  %v2516_v0 = vsel %vm341_vm4, %v2515_v44, %v2511_v9 }
 0x488   :  { %v2520_v50 = vrot.slane %v2385_v16, %v2990_v28  ;;  %v2525_v6 = vrot.slane %v2388_v5, %v2997_v60  ;;  %v2447_v28 = vsel %vm355_vm6, %v2446_v37, %v2442_v63 }
 0x489   :  { %v2452_v57 = vsel %vm362_vm7, %v2451_v2, %v2447_v28 }
 0x48a   :  { %v2521_v46 = vsel %vm348_vm5, %v2520_v50, %v2516_v0 }
 0x48b   :  { %v2394_v58 = vpop.permute.xlu1 %2393  ;;  %v2391_v39 = vpop.permute.xlu0 %2390  ;;  %v2526_v60 = vsel %vm355_vm6, %v2525_v6, %v2521_v46 }
 0x48c   :  { %v2530_v62 = vrot.slane %v2391_v39, %v3002_v10  ;;  %v2535_v26 = vrot.slane %v2394_v58, %v3009_v4  ;;  %v2457_v10 = vsel %vm369_vm8, %v2456_v24, %v2452_v57 }
 0x48d   :  { %v2462_v33 = vsel %vm376_vm9, %v2461_v15, %v2457_v10 }
 0x48e   :  { %v2531_v14 = vsel %vm362_vm7, %v2530_v62, %v2526_v60 }
 0x48f   :  { %v2400_v38 = vpop.permute.xlu1 %2399  ;;  %v2397_v45 = vpop.permute.xlu0 %2396  ;;  %v2536_v4 = vsel %vm369_vm8, %v2535_v26, %v2531_v14 }
 0x490   :  { %v2540_v41 = vrot.slane %v2397_v45, %v3014_v29  ;;  %v2545_v34 = vrot.slane %v2400_v38, %v3021_v25  ;;  %v2467_v29 = vsel %vm383_vm10, %v2466_v11, %v2462_v33 }
 0x492   :  { %v2541_v22 = vsel %vm376_vm9, %v2540_v41, %v2536_v4 }
 0x493   :  { %v2358_v40 = vpop.permute.xlu1 %2357  ;;  %v2403_v27 = vpop.permute.xlu0 %2402  ;;  %v2546_v48 = vsel %vm383_vm10, %v2545_v34, %v2541_v22 }
 0x494   :  { %v2550_v23 = vrot.slane %v2403_v27, %v3026_v51  ;;  %v2476_v55 = vrot.slane %v2358_v40, %v3033_v1  ;;  %v2472_v51 = vsel %vm390_vm11, %v2471_v36, %v2467_v29 }
 0x496   :  { %v2551_v38 = vsel %vm390_vm11, %v2550_v23, %v2546_v48  ;;  %v2477_v54 = vsel %vm397_vm12, %v2476_v55, %v2472_v51 }
 0x497   :  { %v2361_v47 = vpop.permute.xlu1 %2360  ;;  %v2406_v35 = vpop.permute.xlu0 %2405 }
 0x498   :  { %v2555_v7 = vrot.slane %v2406_v35, %v3033_v1  ;;  %v2481_v5 = vrot.slane %v2361_v47, %v3038_v3 }
 0x49a   :  { %v2482_v18 = vsel %vm404_vm13, %v2481_v5, %v2477_v54 }
 0x49b   :  { %v2364_v12 = vpop.permute.xlu1 %2363  ;;  %v2409_v13 = vpop.permute.xlu0 %2408 }
 0x49c   :  { %v2560_v25 = vrot.slane %v2409_v13, %v3038_v3  ;;  %v2486_v39 = vrot.slane %v2364_v12, %v3716_v19  ;;  %v2556_v3 = vsel %vm397_vm12, %v2555_v7, %v2551_v38 }
 0x49e   :  { %v2561_v20 = vsel %vm404_vm13, %v2560_v25, %v2556_v3 }
 0x49f   :  { %v2367_v56 = vpop.permute.xlu1 %2366  ;;  %v2412_v17 = vpop.permute.xlu0 %2411 }
 0x4a0   :  { %v2565_v21 = vrot.slane %v2412_v17, %v3716_v19  ;;  %v2491_v45 = vrot.slane %v2367_v56, %v3714_v59  ;;  %v2487_v19 = vsel %vm411_vm14, %v2486_v39, %v2482_v18 }
 0x4a2   :  { %v2566_v49 = vsel %vm411_vm14, %v2565_v21, %v2561_v20  ;;  %v2492_v40 = vsel %vm418_vm15, %v2491_v45, %v2487_v19 }
 0x4a3   :  { %v2370_v16 = vpop.permute.xlu1 %2369  ;;  %v2415_v58 = vpop.permute.xlu0 %2414 }
 0x4a4   :  { %v2570_v1 = vrot.slane %v2415_v58, %v3714_v59  ;;  %v2496_v31 = vrot.slane %v2370_v16, %v3733_v52 }
 0x4a6   :  { %v2571_v59 = vsel %vm418_vm15, %v2570_v1, %v2566_v49  ;;  %v2497_v27 = vsel %vm425_vm0, %v2496_v31, %v2492_v40 }
 0x4a7   :  { %v2418_v42 = vpop.permute.xlu0 %2417 }
 0x4a8   :  { %v2575_v30 = vrot.slane %v2418_v42, %v3733_v52 }
 0x4aa   :  { %v2576_v53 = vsel %vm425_vm0, %v2575_v30, %v2571_v59 }
 0x4ab   :  { %v2577_v44 = vsel %vm506_vm1, %v2576_v53, %v2497_v27 }
 0x4ac   :  { %v2579_v43 = vadd.f32 %v2577_v44, %v3493_v32 }
 0x4ae   :  { %2580 = vst [vmem:[#allocation2] sm:$0x3] %v2579_v43 }
 0x4af   :  { %2621 = shalt.err (!%p2618_p4)
}
 0x4b0   :  { %s2622_s12 = scalar_lea.hbm %s3593_s4, 32 }
 0x4b1   :  { %p2623_p5 = scmp.ne.s32.totalorder %s3593_s4, %s2622_s12  ;;  %p2626_p6 = scmp.lt.u32.totalorder %s2622_s12, %s3593_s4 }
 0x4b3   :  { %p2628_p7 = pnand %p2626_p6, %p2623_p5 }
 0x4b5   :  { %2631 = shalt.err (!%p2628_p7)
}
 0x4b6   :  { %2590 = dma.vmem_to_hbm [thread:$0]  %s2588_s8, 32, %s3593_s4, [#allocation3]  }
 0x4b7   :  { %2632 = dma.done.wait [#allocation3], 32  }
 0x4b8   :  { %2633 = vsyncadd [#allocation3], 4294967264 }
 0x4b9   :  { %2594 = vsyncpa [#allocation3], 1 }

</bundles_post_ra>
